<compile_context>
chip_gen: v7x
topology: tpu7x:2x2x1
jax: 0.10.0
libtpu: 0.0.40
codegen_flags: <defaults>
</compile_context>

<pallas_src>
import functools
import math

import jax
import jax.numpy as jnp
from jax.experimental import pallas as pl
from jax.experimental.pallas import tpu as pltpu


# ----------------------------- fused kernel -----------------------------

def _layernorm(x, g, b, eps=1e-12):
    mu = jnp.mean(x, axis=-1, keepdims=True)
    xc = x - mu
    var = jnp.mean(xc * xc, axis=-1, keepdims=True)
    return xc * jax.lax.rsqrt(var + eps) * g + b


def _fused_forward_kernel(tok_ref, x_ref, emb_g_ref, emb_b_ref, *refs,
                          num_layers, num_heads):
    """One grid step = one batch element: full BERT encoder + pooler + logit."""
    out_ref = refs[-1]
    pool_w_ref, pool_b_ref, logit_w_ref, logit_b_ref = refs[-5:-1]
    layer_refs = refs[:-5]

    S, H = x_ref.shape
    DH = H // num_heads
    scale = 1.0 / math.sqrt(DH)

    # BERT extended attention mask from (tokens > 0): additive key bias,
    # one row broadcast over all query rows / heads.
    tok = tok_ref[0]                                       # (1, S) int32
    bias = jnp.where(tok > 0, 0.0, -10000.0)               # (1, S) f32

    # Embedding LayerNorm (embedding sum is provided by the wrapper).
    x = _layernorm(x_ref[...], emb_g_ref[...], emb_b_ref[...])    # (S, H)

    for l in range(num_layers):   # static unroll: all weights live in VMEM
        (wqkv_ref, bqkv_ref, wo_ref, bo_ref, ag_ref, ab_ref,
         w1_ref, b1_ref, w2_ref, b2_ref, fg_ref, fb_ref) = layer_refs[12 * l:12 * (l + 1)]

        # Fused Q/K/V projection: one (S,H) @ (H,3H) matmul.
        qkv = jnp.dot(x, wqkv_ref[...],
                      preferred_element_type=jnp.float32) + bqkv_ref[...]   # (S, 3H)

        # Per-head attention; output projection is accumulated head-by-head
        # (ctx @ wo == sum_h ctx_h @ wo[h*DH:(h+1)*DH, :]) so no concat/scratch needed.
        wo = wo_ref[...]
        attn = jnp.zeros((S, H), jnp.float32)
        for h in range(num_heads):
            q = qkv[:, h * DH:(h + 1) * DH]                       # (S, DH)
            k = qkv[:, H + h * DH:H + (h + 1) * DH]               # (S, DH)
            v = qkv[:, 2 * H + h * DH:2 * H + (h + 1) * DH]       # (S, DH)
            s = jax.lax.dot_general(q, k, (((1,), (1,)), ((), ())),
                                    preferred_element_type=jnp.float32) * scale
            s = s + bias                                           # key mask
            s = s - jnp.max(s, axis=-1, keepdims=True)
            p = jnp.exp(s)
            p = p * pl.reciprocal(jnp.sum(p, axis=-1, keepdims=True), approx=True)
            ctx = jnp.dot(p, v, preferred_element_type=jnp.float32)          # (S, DH)
            attn = attn + jnp.dot(ctx, wo[h * DH:(h + 1) * DH, :],
                                  preferred_element_type=jnp.float32)
        a = attn + bo_ref[...]
        x = _layernorm(x + a, ag_ref[...], ab_ref[...])

        # Feed-forward.
        # TODO(synk): HF BERT uses exact erf-GELU; tanh approximation used here.
        hmid = jnp.dot(x, w1_ref[...], preferred_element_type=jnp.float32) + b1_ref[...]
        hmid = jax.nn.gelu(hmid, approximate=True)
        hout = jnp.dot(hmid, w2_ref[...], preferred_element_type=jnp.float32) + b2_ref[...]
        x = _layernorm(x + hout, fg_ref[...], fb_ref[...])

    # hidden_states[-1][:, 0] -> CLS row of the last layer, then pooler + logit.
    cls = x[0:1, :]                                                   # (1, H)
    ft = jnp.tanh(jnp.dot(cls, pool_w_ref[...],
                          preferred_element_type=jnp.float32) + pool_b_ref[...])
    logit = jnp.dot(ft, logit_w_ref[...],
                    preferred_element_type=jnp.float32) + logit_b_ref[...]    # (1, 1)
    out_ref[0] = logit


# ----------------------------- parameters -----------------------------

def init_params(key, vocab, hidden, num_layers, num_heads, intermediate,
                max_pos, num_classes=1):
    keys = iter(jax.random.split(key, 8 * num_layers + 8))

    def nrm(shape):
        return 0.02 * jax.random.normal(next(keys), shape, jnp.float32)

    zeros = lambda n: jnp.zeros((n,), jnp.float32)
    ones = lambda n: jnp.ones((n,), jnp.float32)

    params = dict(
        word_emb=nrm((vocab, hidden)),
        pos_emb=nrm((max_pos, hidden)),
        type_emb=nrm((2, hidden)),
        emb_ln_g=ones(hidden), emb_ln_b=zeros(hidden),
        layers=[],
        pool_w=nrm((hidden, hidden)), pool_b=zeros(hidden),              # nn.Linear(H, H) + Tanh
        logit_w=nrm((hidden, num_classes)), logit_b=zeros(num_classes),  # nn.Linear(H, 1)
    )
    for _ in range(num_layers):
        params['layers'].append(dict(
            wq=nrm((hidden, hidden)), bq=zeros(hidden),
            wk=nrm((hidden, hidden)), bk=zeros(hidden),
            wv=nrm((hidden, hidden)), bv=zeros(hidden),
            wo=nrm((hidden, hidden)), bo=zeros(hidden),
            attn_ln_g=ones(hidden), attn_ln_b=zeros(hidden),
            w1=nrm((hidden, intermediate)), b1=zeros(intermediate),
            w2=nrm((intermediate, hidden)), b2=zeros(hidden),
            ffn_ln_g=ones(hidden), ffn_ln_b=zeros(hidden),
        ))
    return params


# ----------------------------- forward pass -----------------------------

def transformer_forward(params, tokens, num_heads):
    B, S = tokens.shape
    H = params['word_emb'].shape[1]
    L = len(params['layers'])

    # XLA-side prep: one tiny 16-row gather + positional/type add.
    # TODO(synk): embedding row-gather stays in XLA; an in-kernel scalar-prefetch /
    # one-hot gather adds nothing at this size.
    x_emb = (params['word_emb'][tokens]
             + params['pos_emb'][:S][None, :, :]
             + params['type_emb'][0][None, None, :]).astype(jnp.float32).reshape(B * S, H)
    tok3 = tokens.astype(jnp.int32).reshape(B, 1, S)

    row = lambda v: v.reshape(1, -1)

    # Flatten weights; fuse wq/wk/wv -> (H, 3H) and bq/bk/bv -> (3H,) once.
    flat = [row(params['emb_ln_g']), row(params['emb_ln_b'])]
    for lyr in params['layers']:
        wqkv = jnp.concatenate([lyr['wq'], lyr['wk'], lyr['wv']], axis=1)
        bqkv = jnp.concatenate([lyr['bq'], lyr['bk'], lyr['bv']], axis=0)
        flat += [wqkv, row(bqkv), lyr['wo'], row(lyr['bo']),
                 row(lyr['attn_ln_g']), row(lyr['attn_ln_b']),
                 lyr['w1'], row(lyr['b1']), lyr['w2'], row(lyr['b2']),
                 row(lyr['ffn_ln_g']), row(lyr['ffn_ln_b'])]
    flat += [params['pool_w'], row(params['pool_b']),
             params['logit_w'], row(params['logit_b'])]

    in_specs = ([pl.BlockSpec((1, 1, S), lambda b: (b, 0, 0)),   # tokens (for the mask)
                 pl.BlockSpec((S, H), lambda b: (b, 0))]         # embedded activations
                + [pl.BlockSpec(w.shape, lambda b: (0, 0)) for w in flat])

    kernel = functools.partial(_fused_forward_kernel,
                               num_layers=L, num_heads=num_heads)
    out = pl.pallas_call(
        kernel,
        grid=(B,),
        in_specs=in_specs,
        out_specs=pl.BlockSpec((1, 1, 1), lambda b: (b, 0, 0)),
        out_shape=jax.ShapeDtypeStruct((B, 1, 1), jnp.float32),
        compiler_params=pltpu.CompilerParams(dimension_semantics=("parallel",)),
    )(tok3, x_emb, *flat)
    return out.reshape(B, 1)


# ----------------------------- main -----------------------------

if __name__ == "__main__":
    VOCAB, HIDDEN, LAYERS, HEADS, INTER, MAXPOS = 100, 32, 2, 4, 64, 16
    B, S = 2, 8

    key = jax.random.PRNGKey(0)
    pkey, tkey = jax.random.split(key)
    params = init_params(pkey, VOCAB, HIDDEN, LAYERS, HEADS, INTER, MAXPOS)

    tokens = jax.random.randint(tkey, (B, S), 1, VOCAB, dtype=jnp.int32)
    tokens = tokens.at[:, 0].set(2)       # CLS-like token
    tokens = tokens.at[:, -2:].set(0)     # padding -> exercises the attention mask

    fwd = jax.jit(transformer_forward, static_argnums=2)
    logits = fwd(params, tokens, HEADS)
    jax.block_until_ready(logits)
    assert logits.shape == (B, 1) and logits.dtype == jnp.float32
    print("KERNEL_OK")
</pallas_src>

<mosaic_0001>
module attributes {stable_mosaic.version = 11 : i64} {
  func.func @_fused_forward_kernel(%arg0: i32, %arg1: memref<1x1x8xi32, #tpu.memory_space<vmem>>, %arg2: memref<8x32xf32, #tpu.memory_space<vmem>>, %arg3: memref<1x32xf32, #tpu.memory_space<vmem>>, %arg4: memref<1x32xf32, #tpu.memory_space<vmem>>, %arg5: memref<32x96xf32, #tpu.memory_space<vmem>>, %arg6: memref<1x96xf32, #tpu.memory_space<vmem>>, %arg7: memref<32x32xf32, #tpu.memory_space<vmem>>, %arg8: memref<1x32xf32, #tpu.memory_space<vmem>>, %arg9: memref<1x32xf32, #tpu.memory_space<vmem>>, %arg10: memref<1x32xf32, #tpu.memory_space<vmem>>, %arg11: memref<32x64xf32, #tpu.memory_space<vmem>>, %arg12: memref<1x64xf32, #tpu.memory_space<vmem>>, %arg13: memref<64x32xf32, #tpu.memory_space<vmem>>, %arg14: memref<1x32xf32, #tpu.memory_space<vmem>>, %arg15: memref<1x32xf32, #tpu.memory_space<vmem>>, %arg16: memref<1x32xf32, #tpu.memory_space<vmem>>, %arg17: memref<32x96xf32, #tpu.memory_space<vmem>>, %arg18: memref<1x96xf32, #tpu.memory_space<vmem>>, %arg19: memref<32x32xf32, #tpu.memory_space<vmem>>, %arg20: memref<1x32xf32, #tpu.memory_space<vmem>>, %arg21: memref<1x32xf32, #tpu.memory_space<vmem>>, %arg22: memref<1x32xf32, #tpu.memory_space<vmem>>, %arg23: memref<32x64xf32, #tpu.memory_space<vmem>>, %arg24: memref<1x64xf32, #tpu.memory_space<vmem>>, %arg25: memref<64x32xf32, #tpu.memory_space<vmem>>, %arg26: memref<1x32xf32, #tpu.memory_space<vmem>>, %arg27: memref<1x32xf32, #tpu.memory_space<vmem>>, %arg28: memref<1x32xf32, #tpu.memory_space<vmem>>, %arg29: memref<32x32xf32, #tpu.memory_space<vmem>>, %arg30: memref<1x32xf32, #tpu.memory_space<vmem>>, %arg31: memref<32x1xf32, #tpu.memory_space<vmem>>, %arg32: memref<1x1xf32, #tpu.memory_space<vmem>>, %arg33: memref<1x1x1xf32, #tpu.memory_space<vmem>>) attributes {dimension_semantics = [#tpu.dimension_semantics<parallel>], iteration_bounds = array<i64: 2>, scalar_prefetch = 0 : i64, scratch_operands = 0 : i64, tpu.core_type = #tpu.core_type<tc>, window_params = [{transform_indices = @transform_0, window_bounds = array<i64: 1, 1, 8>}, {transform_indices = @transform_1, window_bounds = array<i64: 8, 32>}, {pipeline_mode = #tpu.pipeline_mode<synchronous>, transform_indices = @transform_2, window_bounds = array<i64: 1, 32>}, {pipeline_mode = #tpu.pipeline_mode<synchronous>, transform_indices = @transform_3, window_bounds = array<i64: 1, 32>}, {pipeline_mode = #tpu.pipeline_mode<synchronous>, transform_indices = @transform_4, window_bounds = array<i64: 32, 96>}, {pipeline_mode = #tpu.pipeline_mode<synchronous>, transform_indices = @transform_5, window_bounds = array<i64: 1, 96>}, {pipeline_mode = #tpu.pipeline_mode<synchronous>, transform_indices = @transform_6, window_bounds = array<i64: 32, 32>}, {pipeline_mode = #tpu.pipeline_mode<synchronous>, transform_indices = @transform_7, window_bounds = array<i64: 1, 32>}, {pipeline_mode = #tpu.pipeline_mode<synchronous>, transform_indices = @transform_8, window_bounds = array<i64: 1, 32>}, {pipeline_mode = #tpu.pipeline_mode<synchronous>, transform_indices = @transform_9, window_bounds = array<i64: 1, 32>}, {pipeline_mode = #tpu.pipeline_mode<synchronous>, transform_indices = @transform_10, window_bounds = array<i64: 32, 64>}, {pipeline_mode = #tpu.pipeline_mode<synchronous>, transform_indices = @transform_11, window_bounds = array<i64: 1, 64>}, {pipeline_mode = #tpu.pipeline_mode<synchronous>, transform_indices = @transform_12, window_bounds = array<i64: 64, 32>}, {pipeline_mode = #tpu.pipeline_mode<synchronous>, transform_indices = @transform_13, window_bounds = array<i64: 1, 32>}, {pipeline_mode = #tpu.pipeline_mode<synchronous>, transform_indices = @transform_14, window_bounds = array<i64: 1, 32>}, {pipeline_mode = #tpu.pipeline_mode<synchronous>, transform_indices = @transform_15, window_bounds = array<i64: 1, 32>}, {pipeline_mode = #tpu.pipeline_mode<synchronous>, transform_indices = @transform_16, window_bounds = array<i64: 32, 96>}, {pipeline_mode = #tpu.pipeline_mode<synchronous>, transform_indices = @transform_17, window_bounds = array<i64: 1, 96>}, {pipeline_mode = #tpu.pipeline_mode<synchronous>, transform_indices = @transform_18, window_bounds = array<i64: 32, 32>}, {pipeline_mode = #tpu.pipeline_mode<synchronous>, transform_indices = @transform_19, window_bounds = array<i64: 1, 32>}, {pipeline_mode = #tpu.pipeline_mode<synchronous>, transform_indices = @transform_20, window_bounds = array<i64: 1, 32>}, {pipeline_mode = #tpu.pipeline_mode<synchronous>, transform_indices = @transform_21, window_bounds = array<i64: 1, 32>}, {pipeline_mode = #tpu.pipeline_mode<synchronous>, transform_indices = @transform_22, window_bounds = array<i64: 32, 64>}, {pipeline_mode = #tpu.pipeline_mode<synchronous>, transform_indices = @transform_23, window_bounds = array<i64: 1, 64>}, {pipeline_mode = #tpu.pipeline_mode<synchronous>, transform_indices = @transform_24, window_bounds = array<i64: 64, 32>}, {pipeline_mode = #tpu.pipeline_mode<synchronous>, transform_indices = @transform_25, window_bounds = array<i64: 1, 32>}, {pipeline_mode = #tpu.pipeline_mode<synchronous>, transform_indices = @transform_26, window_bounds = array<i64: 1, 32>}, {pipeline_mode = #tpu.pipeline_mode<synchronous>, transform_indices = @transform_27, window_bounds = array<i64: 1, 32>}, {pipeline_mode = #tpu.pipeline_mode<synchronous>, transform_indices = @transform_28, window_bounds = array<i64: 32, 32>}, {pipeline_mode = #tpu.pipeline_mode<synchronous>, transform_indices = @transform_29, window_bounds = array<i64: 1, 32>}, {pipeline_mode = #tpu.pipeline_mode<synchronous>, transform_indices = @transform_30, window_bounds = array<i64: 32, 1>}, {pipeline_mode = #tpu.pipeline_mode<synchronous>, transform_indices = @transform_31, window_bounds = array<i64: 1, 1>}, {transform_indices = @transform_32, window_bounds = array<i64: 1, 1, 1>}]} {
    %c0 = arith.constant 0 : index
    %c0_0 = arith.constant 0 : index
    %c0_1 = arith.constant 0 : index
    %0 = vector.load %arg1[%c0, %c0_0, %c0_1] : memref<1x1x8xi32, #tpu.memory_space<vmem>>, vector<1x1x8xi32>
    %1 = vector.shape_cast %0 : vector<1x1x8xi32> to vector<1x8xi32>
    %c0_i32 = arith.constant 0 : i32
    %2 = vector.broadcast %c0_i32 : i32 to vector<1x8xi32>
    %3 = arith.cmpi sgt, %1, %2 : vector<1x8xi32>
    %cst = arith.constant 0.000000e+00 : f32
    %cst_2 = arith.constant -1.000000e+04 : f32
    %4 = vector.broadcast %cst : f32 to vector<1x8xf32>
    %5 = vector.broadcast %cst_2 : f32 to vector<1x8xf32>
    %6 = arith.select %3, %4, %5 : vector<1x8xi1>, vector<1x8xf32>
    %c0_3 = arith.constant 0 : index
    %c0_4 = arith.constant 0 : index
    %7 = vector.load %arg2[%c0_3, %c0_4] : memref<8x32xf32, #tpu.memory_space<vmem>>, vector<8x32xf32>
    %c0_5 = arith.constant 0 : index
    %c0_6 = arith.constant 0 : index
    %8 = vector.load %arg3[%c0_5, %c0_6] : memref<1x32xf32, #tpu.memory_space<vmem>>, vector<1x32xf32>
    %c0_7 = arith.constant 0 : index
    %c0_8 = arith.constant 0 : index
    %9 = vector.load %arg4[%c0_7, %c0_8] : memref<1x32xf32, #tpu.memory_space<vmem>>, vector<1x32xf32>
    %cst_9 = arith.constant dense<0.000000e+00> : vector<8xf32>
    %10 = vector.multi_reduction <add>, %7, %cst_9 [1] : vector<8x32xf32> to vector<8xf32>
    %11 = vector.shape_cast %10 : vector<8xf32> to vector<8x1xf32>
    %cst_10 = arith.constant 3.200000e+01 : f32
    %12 = vector.broadcast %cst_10 : f32 to vector<8x1xf32>
    %13 = arith.divf %11, %12 : vector<8x1xf32>
    %14 = vector.broadcast %13 : vector<8x1xf32> to vector<8x32xf32>
    %15 = arith.subf %7, %14 : vector<8x32xf32>
    %16 = arith.mulf %15, %15 : vector<8x32xf32>
    %cst_11 = arith.constant dense<0.000000e+00> : vector<8xf32>
    %17 = vector.multi_reduction <add>, %16, %cst_11 [1] : vector<8x32xf32> to vector<8xf32>
    %18 = vector.shape_cast %17 : vector<8xf32> to vector<8x1xf32>
    %cst_12 = arith.constant 3.200000e+01 : f32
    %19 = vector.broadcast %cst_12 : f32 to vector<8x1xf32>
    %20 = arith.divf %18, %19 : vector<8x1xf32>
    %cst_13 = arith.constant 9.99999996E-13 : f32
    %21 = vector.broadcast %cst_13 : f32 to vector<8x1xf32>
    %22 = arith.addf %20, %21 : vector<8x1xf32>
    %23 = math.rsqrt %22 : vector<8x1xf32>
    %24 = vector.broadcast %23 : vector<8x1xf32> to vector<8x32xf32>
    %25 = arith.mulf %15, %24 : vector<8x32xf32>
    %26 = vector.broadcast %8 : vector<1x32xf32> to vector<8x32xf32>
    %27 = arith.mulf %25, %26 : vector<8x32xf32>
    %28 = vector.broadcast %9 : vector<1x32xf32> to vector<8x32xf32>
    %29 = arith.addf %27, %28 : vector<8x32xf32>
    %c0_14 = arith.constant 0 : index
    %c0_15 = arith.constant 0 : index
    %30 = vector.load %arg5[%c0_14, %c0_15] : memref<32x96xf32, #tpu.memory_space<vmem>>, vector<32x96xf32>
    %cst_16 = arith.constant dense<0.000000e+00> : vector<8x96xf32>
    %31 = tpu.matmul %29, %30, %cst_16 {dimension_numbers = #tpu.dot_dimension_numbers<[1], [0], [0], [1], [0, 0, 1, 1], [], []>} : vector<8x32xf32>, vector<32x96xf32>, vector<8x96xf32> -> vector<8x96xf32>
    %c0_17 = arith.constant 0 : index
    %c0_18 = arith.constant 0 : index
    %32 = vector.load %arg6[%c0_17, %c0_18] : memref<1x96xf32, #tpu.memory_space<vmem>>, vector<1x96xf32>
    %33 = vector.broadcast %32 : vector<1x96xf32> to vector<8x96xf32>
    %34 = arith.addf %31, %33 : vector<8x96xf32>
    %c0_19 = arith.constant 0 : index
    %c0_20 = arith.constant 0 : index
    %35 = vector.load %arg7[%c0_19, %c0_20] : memref<32x32xf32, #tpu.memory_space<vmem>>, vector<32x32xf32>
    %cst_21 = arith.constant 0.000000e+00 : f32
    %36 = vector.broadcast %cst_21 : f32 to vector<8x32xf32>
    %37 = vector.extract_strided_slice %34 {offsets = [0, 0], sizes = [8, 8], strides = [1, 1]} : vector<8x96xf32> to vector<8x8xf32>
    %38 = vector.extract_strided_slice %34 {offsets = [0, 32], sizes = [8, 8], strides = [1, 1]} : vector<8x96xf32> to vector<8x8xf32>
    %39 = vector.extract_strided_slice %34 {offsets = [0, 64], sizes = [8, 8], strides = [1, 1]} : vector<8x96xf32> to vector<8x8xf32>
    %cst_22 = arith.constant dense<0.000000e+00> : vector<8x8xf32>
    %40 = tpu.matmul %37, %38, %cst_22 {dimension_numbers = #tpu.dot_dimension_numbers<[1], [1], [0], [0], [0, 0, 1, 0], [], []>} : vector<8x8xf32>, vector<8x8xf32>, vector<8x8xf32> -> vector<8x8xf32>
    %cst_23 = arith.constant 0.353553385 : f32
    %41 = vector.broadcast %cst_23 : f32 to vector<8x8xf32>
    %42 = arith.mulf %40, %41 : vector<8x8xf32>
    %43 = vector.broadcast %6 : vector<1x8xf32> to vector<8x8xf32>
    %44 = arith.addf %42, %43 : vector<8x8xf32>
    %cst_24 = arith.constant dense<0xFF800000> : vector<8xf32>
    %45 = vector.multi_reduction <maximumf>, %44, %cst_24 [1] : vector<8x8xf32> to vector<8xf32>
    %46 = vector.shape_cast %45 : vector<8xf32> to vector<8x1xf32>
    %47 = vector.broadcast %46 : vector<8x1xf32> to vector<8x8xf32>
    %48 = arith.subf %44, %47 : vector<8x8xf32>
    %49 = math.exp %48 : vector<8x8xf32>
    %cst_25 = arith.constant dense<0.000000e+00> : vector<8xf32>
    %50 = vector.multi_reduction <add>, %49, %cst_25 [1] : vector<8x8xf32> to vector<8xf32>
    %51 = vector.shape_cast %50 : vector<8xf32> to vector<8x1xf32>
    %52 = tpu.reciprocal %51 {approx = true} : vector<8x1xf32> -> vector<8x1xf32>
    %53 = vector.broadcast %52 : vector<8x1xf32> to vector<8x8xf32>
    %54 = arith.mulf %49, %53 : vector<8x8xf32>
    %cst_26 = arith.constant dense<0.000000e+00> : vector<8x8xf32>
    %55 = tpu.matmul %54, %39, %cst_26 {dimension_numbers = #tpu.dot_dimension_numbers<[1], [0], [0], [1], [0, 0, 1, 1], [], []>} : vector<8x8xf32>, vector<8x8xf32>, vector<8x8xf32> -> vector<8x8xf32>
    %56 = vector.extract_strided_slice %35 {offsets = [0, 0], sizes = [8, 32], strides = [1, 1]} : vector<32x32xf32> to vector<8x32xf32>
    %cst_27 = arith.constant dense<0.000000e+00> : vector<8x32xf32>
    %57 = tpu.matmul %55, %56, %cst_27 {dimension_numbers = #tpu.dot_dimension_numbers<[1], [0], [0], [1], [0, 0, 1, 1], [], []>} : vector<8x8xf32>, vector<8x32xf32>, vector<8x32xf32> -> vector<8x32xf32>
    %58 = arith.addf %36, %57 : vector<8x32xf32>
    %59 = vector.extract_strided_slice %34 {offsets = [0, 8], sizes = [8, 8], strides = [1, 1]} : vector<8x96xf32> to vector<8x8xf32>
    %60 = vector.extract_strided_slice %34 {offsets = [0, 40], sizes = [8, 8], strides = [1, 1]} : vector<8x96xf32> to vector<8x8xf32>
    %61 = vector.extract_strided_slice %34 {offsets = [0, 72], sizes = [8, 8], strides = [1, 1]} : vector<8x96xf32> to vector<8x8xf32>
    %cst_28 = arith.constant dense<0.000000e+00> : vector<8x8xf32>
    %62 = tpu.matmul %59, %60, %cst_28 {dimension_numbers = #tpu.dot_dimension_numbers<[1], [1], [0], [0], [0, 0, 1, 0], [], []>} : vector<8x8xf32>, vector<8x8xf32>, vector<8x8xf32> -> vector<8x8xf32>
    %cst_29 = arith.constant 0.353553385 : f32
    %63 = vector.broadcast %cst_29 : f32 to vector<8x8xf32>
    %64 = arith.mulf %62, %63 : vector<8x8xf32>
    %65 = vector.broadcast %6 : vector<1x8xf32> to vector<8x8xf32>
    %66 = arith.addf %64, %65 : vector<8x8xf32>
    %cst_30 = arith.constant dense<0xFF800000> : vector<8xf32>
    %67 = vector.multi_reduction <maximumf>, %66, %cst_30 [1] : vector<8x8xf32> to vector<8xf32>
    %68 = vector.shape_cast %67 : vector<8xf32> to vector<8x1xf32>
    %69 = vector.broadcast %68 : vector<8x1xf32> to vector<8x8xf32>
    %70 = arith.subf %66, %69 : vector<8x8xf32>
    %71 = math.exp %70 : vector<8x8xf32>
    %cst_31 = arith.constant dense<0.000000e+00> : vector<8xf32>
    %72 = vector.multi_reduction <add>, %71, %cst_31 [1] : vector<8x8xf32> to vector<8xf32>
    %73 = vector.shape_cast %72 : vector<8xf32> to vector<8x1xf32>
    %74 = tpu.reciprocal %73 {approx = true} : vector<8x1xf32> -> vector<8x1xf32>
    %75 = vector.broadcast %74 : vector<8x1xf32> to vector<8x8xf32>
    %76 = arith.mulf %71, %75 : vector<8x8xf32>
    %cst_32 = arith.constant dense<0.000000e+00> : vector<8x8xf32>
    %77 = tpu.matmul %76, %61, %cst_32 {dimension_numbers = #tpu.dot_dimension_numbers<[1], [0], [0], [1], [0, 0, 1, 1], [], []>} : vector<8x8xf32>, vector<8x8xf32>, vector<8x8xf32> -> vector<8x8xf32>
    %78 = vector.extract_strided_slice %35 {offsets = [8, 0], sizes = [8, 32], strides = [1, 1]} : vector<32x32xf32> to vector<8x32xf32>
    %cst_33 = arith.constant dense<0.000000e+00> : vector<8x32xf32>
    %79 = tpu.matmul %77, %78, %cst_33 {dimension_numbers = #tpu.dot_dimension_numbers<[1], [0], [0], [1], [0, 0, 1, 1], [], []>} : vector<8x8xf32>, vector<8x32xf32>, vector<8x32xf32> -> vector<8x32xf32>
    %80 = arith.addf %58, %79 : vector<8x32xf32>
    %81 = vector.extract_strided_slice %34 {offsets = [0, 16], sizes = [8, 8], strides = [1, 1]} : vector<8x96xf32> to vector<8x8xf32>
    %82 = vector.extract_strided_slice %34 {offsets = [0, 48], sizes = [8, 8], strides = [1, 1]} : vector<8x96xf32> to vector<8x8xf32>
    %83 = vector.extract_strided_slice %34 {offsets = [0, 80], sizes = [8, 8], strides = [1, 1]} : vector<8x96xf32> to vector<8x8xf32>
    %cst_34 = arith.constant dense<0.000000e+00> : vector<8x8xf32>
    %84 = tpu.matmul %81, %82, %cst_34 {dimension_numbers = #tpu.dot_dimension_numbers<[1], [1], [0], [0], [0, 0, 1, 0], [], []>} : vector<8x8xf32>, vector<8x8xf32>, vector<8x8xf32> -> vector<8x8xf32>
    %cst_35 = arith.constant 0.353553385 : f32
    %85 = vector.broadcast %cst_35 : f32 to vector<8x8xf32>
    %86 = arith.mulf %84, %85 : vector<8x8xf32>
    %87 = vector.broadcast %6 : vector<1x8xf32> to vector<8x8xf32>
    %88 = arith.addf %86, %87 : vector<8x8xf32>
    %cst_36 = arith.constant dense<0xFF800000> : vector<8xf32>
    %89 = vector.multi_reduction <maximumf>, %88, %cst_36 [1] : vector<8x8xf32> to vector<8xf32>
    %90 = vector.shape_cast %89 : vector<8xf32> to vector<8x1xf32>
    %91 = vector.broadcast %90 : vector<8x1xf32> to vector<8x8xf32>
    %92 = arith.subf %88, %91 : vector<8x8xf32>
    %93 = math.exp %92 : vector<8x8xf32>
    %cst_37 = arith.constant dense<0.000000e+00> : vector<8xf32>
    %94 = vector.multi_reduction <add>, %93, %cst_37 [1] : vector<8x8xf32> to vector<8xf32>
    %95 = vector.shape_cast %94 : vector<8xf32> to vector<8x1xf32>
    %96 = tpu.reciprocal %95 {approx = true} : vector<8x1xf32> -> vector<8x1xf32>
    %97 = vector.broadcast %96 : vector<8x1xf32> to vector<8x8xf32>
    %98 = arith.mulf %93, %97 : vector<8x8xf32>
    %cst_38 = arith.constant dense<0.000000e+00> : vector<8x8xf32>
    %99 = tpu.matmul %98, %83, %cst_38 {dimension_numbers = #tpu.dot_dimension_numbers<[1], [0], [0], [1], [0, 0, 1, 1], [], []>} : vector<8x8xf32>, vector<8x8xf32>, vector<8x8xf32> -> vector<8x8xf32>
    %100 = vector.extract_strided_slice %35 {offsets = [16, 0], sizes = [8, 32], strides = [1, 1]} : vector<32x32xf32> to vector<8x32xf32>
    %cst_39 = arith.constant dense<0.000000e+00> : vector<8x32xf32>
    %101 = tpu.matmul %99, %100, %cst_39 {dimension_numbers = #tpu.dot_dimension_numbers<[1], [0], [0], [1], [0, 0, 1, 1], [], []>} : vector<8x8xf32>, vector<8x32xf32>, vector<8x32xf32> -> vector<8x32xf32>
    %102 = arith.addf %80, %101 : vector<8x32xf32>
    %103 = vector.extract_strided_slice %34 {offsets = [0, 24], sizes = [8, 8], strides = [1, 1]} : vector<8x96xf32> to vector<8x8xf32>
    %104 = vector.extract_strided_slice %34 {offsets = [0, 56], sizes = [8, 8], strides = [1, 1]} : vector<8x96xf32> to vector<8x8xf32>
    %105 = vector.extract_strided_slice %34 {offsets = [0, 88], sizes = [8, 8], strides = [1, 1]} : vector<8x96xf32> to vector<8x8xf32>
    %cst_40 = arith.constant dense<0.000000e+00> : vector<8x8xf32>
    %106 = tpu.matmul %103, %104, %cst_40 {dimension_numbers = #tpu.dot_dimension_numbers<[1], [1], [0], [0], [0, 0, 1, 0], [], []>} : vector<8x8xf32>, vector<8x8xf32>, vector<8x8xf32> -> vector<8x8xf32>
    %cst_41 = arith.constant 0.353553385 : f32
    %107 = vector.broadcast %cst_41 : f32 to vector<8x8xf32>
    %108 = arith.mulf %106, %107 : vector<8x8xf32>
    %109 = vector.broadcast %6 : vector<1x8xf32> to vector<8x8xf32>
    %110 = arith.addf %108, %109 : vector<8x8xf32>
    %cst_42 = arith.constant dense<0xFF800000> : vector<8xf32>
    %111 = vector.multi_reduction <maximumf>, %110, %cst_42 [1] : vector<8x8xf32> to vector<8xf32>
    %112 = vector.shape_cast %111 : vector<8xf32> to vector<8x1xf32>
    %113 = vector.broadcast %112 : vector<8x1xf32> to vector<8x8xf32>
    %114 = arith.subf %110, %113 : vector<8x8xf32>
    %115 = math.exp %114 : vector<8x8xf32>
    %cst_43 = arith.constant dense<0.000000e+00> : vector<8xf32>
    %116 = vector.multi_reduction <add>, %115, %cst_43 [1] : vector<8x8xf32> to vector<8xf32>
    %117 = vector.shape_cast %116 : vector<8xf32> to vector<8x1xf32>
    %118 = tpu.reciprocal %117 {approx = true} : vector<8x1xf32> -> vector<8x1xf32>
    %119 = vector.broadcast %118 : vector<8x1xf32> to vector<8x8xf32>
    %120 = arith.mulf %115, %119 : vector<8x8xf32>
    %cst_44 = arith.constant dense<0.000000e+00> : vector<8x8xf32>
    %121 = tpu.matmul %120, %105, %cst_44 {dimension_numbers = #tpu.dot_dimension_numbers<[1], [0], [0], [1], [0, 0, 1, 1], [], []>} : vector<8x8xf32>, vector<8x8xf32>, vector<8x8xf32> -> vector<8x8xf32>
    %122 = vector.extract_strided_slice %35 {offsets = [24, 0], sizes = [8, 32], strides = [1, 1]} : vector<32x32xf32> to vector<8x32xf32>
    %cst_45 = arith.constant dense<0.000000e+00> : vector<8x32xf32>
    %123 = tpu.matmul %121, %122, %cst_45 {dimension_numbers = #tpu.dot_dimension_numbers<[1], [0], [0], [1], [0, 0, 1, 1], [], []>} : vector<8x8xf32>, vector<8x32xf32>, vector<8x32xf32> -> vector<8x32xf32>
    %124 = arith.addf %102, %123 : vector<8x32xf32>
    %c0_46 = arith.constant 0 : index
    %c0_47 = arith.constant 0 : index
    %125 = vector.load %arg8[%c0_46, %c0_47] : memref<1x32xf32, #tpu.memory_space<vmem>>, vector<1x32xf32>
    %126 = vector.broadcast %125 : vector<1x32xf32> to vector<8x32xf32>
    %127 = arith.addf %124, %126 : vector<8x32xf32>
    %128 = arith.addf %29, %127 : vector<8x32xf32>
    %c0_48 = arith.constant 0 : index
    %c0_49 = arith.constant 0 : index
    %129 = vector.load %arg9[%c0_48, %c0_49] : memref<1x32xf32, #tpu.memory_space<vmem>>, vector<1x32xf32>
    %c0_50 = arith.constant 0 : index
    %c0_51 = arith.constant 0 : index
    %130 = vector.load %arg10[%c0_50, %c0_51] : memref<1x32xf32, #tpu.memory_space<vmem>>, vector<1x32xf32>
    %cst_52 = arith.constant dense<0.000000e+00> : vector<8xf32>
    %131 = vector.multi_reduction <add>, %128, %cst_52 [1] : vector<8x32xf32> to vector<8xf32>
    %132 = vector.shape_cast %131 : vector<8xf32> to vector<8x1xf32>
    %cst_53 = arith.constant 3.200000e+01 : f32
    %133 = vector.broadcast %cst_53 : f32 to vector<8x1xf32>
    %134 = arith.divf %132, %133 : vector<8x1xf32>
    %135 = vector.broadcast %134 : vector<8x1xf32> to vector<8x32xf32>
    %136 = arith.subf %128, %135 : vector<8x32xf32>
    %137 = arith.mulf %136, %136 : vector<8x32xf32>
    %cst_54 = arith.constant dense<0.000000e+00> : vector<8xf32>
    %138 = vector.multi_reduction <add>, %137, %cst_54 [1] : vector<8x32xf32> to vector<8xf32>
    %139 = vector.shape_cast %138 : vector<8xf32> to vector<8x1xf32>
    %cst_55 = arith.constant 3.200000e+01 : f32
    %140 = vector.broadcast %cst_55 : f32 to vector<8x1xf32>
    %141 = arith.divf %139, %140 : vector<8x1xf32>
    %cst_56 = arith.constant 9.99999996E-13 : f32
    %142 = vector.broadcast %cst_56 : f32 to vector<8x1xf32>
    %143 = arith.addf %141, %142 : vector<8x1xf32>
    %144 = math.rsqrt %143 : vector<8x1xf32>
    %145 = vector.broadcast %144 : vector<8x1xf32> to vector<8x32xf32>
    %146 = arith.mulf %136, %145 : vector<8x32xf32>
    %147 = vector.broadcast %129 : vector<1x32xf32> to vector<8x32xf32>
    %148 = arith.mulf %146, %147 : vector<8x32xf32>
    %149 = vector.broadcast %130 : vector<1x32xf32> to vector<8x32xf32>
    %150 = arith.addf %148, %149 : vector<8x32xf32>
    %c0_57 = arith.constant 0 : index
    %c0_58 = arith.constant 0 : index
    %151 = vector.load %arg11[%c0_57, %c0_58] : memref<32x64xf32, #tpu.memory_space<vmem>>, vector<32x64xf32>
    %cst_59 = arith.constant dense<0.000000e+00> : vector<8x64xf32>
    %152 = tpu.matmul %150, %151, %cst_59 {dimension_numbers = #tpu.dot_dimension_numbers<[1], [0], [0], [1], [0, 0, 1, 1], [], []>} : vector<8x32xf32>, vector<32x64xf32>, vector<8x64xf32> -> vector<8x64xf32>
    %c0_60 = arith.constant 0 : index
    %c0_61 = arith.constant 0 : index
    %153 = vector.load %arg12[%c0_60, %c0_61] : memref<1x64xf32, #tpu.memory_space<vmem>>, vector<1x64xf32>
    %154 = vector.broadcast %153 : vector<1x64xf32> to vector<8x64xf32>
    %155 = arith.addf %152, %154 : vector<8x64xf32>
    %156 = arith.mulf %155, %155 : vector<8x64xf32>
    %157 = arith.mulf %155, %156 : vector<8x64xf32>
    %cst_62 = arith.constant 4.471500e-02 : f32
    %158 = vector.broadcast %cst_62 : f32 to vector<8x64xf32>
    %159 = arith.mulf %158, %157 : vector<8x64xf32>
    %160 = arith.addf %155, %159 : vector<8x64xf32>
    %cst_63 = arith.constant 0.797884583 : f32
    %161 = vector.broadcast %cst_63 : f32 to vector<8x64xf32>
    %162 = arith.mulf %161, %160 : vector<8x64xf32>
    %163 = math.tanh %162 : vector<8x64xf32>
    %cst_64 = arith.constant 1.000000e+00 : f32
    %164 = vector.broadcast %cst_64 : f32 to vector<8x64xf32>
    %165 = arith.addf %164, %163 : vector<8x64xf32>
    %cst_65 = arith.constant 5.000000e-01 : f32
    %166 = vector.broadcast %cst_65 : f32 to vector<8x64xf32>
    %167 = arith.mulf %166, %165 : vector<8x64xf32>
    %168 = arith.mulf %155, %167 : vector<8x64xf32>
    %c0_66 = arith.constant 0 : index
    %c0_67 = arith.constant 0 : index
    %169 = vector.load %arg13[%c0_66, %c0_67] : memref<64x32xf32, #tpu.memory_space<vmem>>, vector<64x32xf32>
    %cst_68 = arith.constant dense<0.000000e+00> : vector<8x32xf32>
    %170 = tpu.matmul %168, %169, %cst_68 {dimension_numbers = #tpu.dot_dimension_numbers<[1], [0], [0], [1], [0, 0, 1, 1], [], []>} : vector<8x64xf32>, vector<64x32xf32>, vector<8x32xf32> -> vector<8x32xf32>
    %c0_69 = arith.constant 0 : index
    %c0_70 = arith.constant 0 : index
    %171 = vector.load %arg14[%c0_69, %c0_70] : memref<1x32xf32, #tpu.memory_space<vmem>>, vector<1x32xf32>
    %172 = vector.broadcast %171 : vector<1x32xf32> to vector<8x32xf32>
    %173 = arith.addf %170, %172 : vector<8x32xf32>
    %174 = arith.addf %150, %173 : vector<8x32xf32>
    %c0_71 = arith.constant 0 : index
    %c0_72 = arith.constant 0 : index
    %175 = vector.load %arg15[%c0_71, %c0_72] : memref<1x32xf32, #tpu.memory_space<vmem>>, vector<1x32xf32>
    %c0_73 = arith.constant 0 : index
    %c0_74 = arith.constant 0 : index
    %176 = vector.load %arg16[%c0_73, %c0_74] : memref<1x32xf32, #tpu.memory_space<vmem>>, vector<1x32xf32>
    %cst_75 = arith.constant dense<0.000000e+00> : vector<8xf32>
    %177 = vector.multi_reduction <add>, %174, %cst_75 [1] : vector<8x32xf32> to vector<8xf32>
    %178 = vector.shape_cast %177 : vector<8xf32> to vector<8x1xf32>
    %cst_76 = arith.constant 3.200000e+01 : f32
    %179 = vector.broadcast %cst_76 : f32 to vector<8x1xf32>
    %180 = arith.divf %178, %179 : vector<8x1xf32>
    %181 = vector.broadcast %180 : vector<8x1xf32> to vector<8x32xf32>
    %182 = arith.subf %174, %181 : vector<8x32xf32>
    %183 = arith.mulf %182, %182 : vector<8x32xf32>
    %cst_77 = arith.constant dense<0.000000e+00> : vector<8xf32>
    %184 = vector.multi_reduction <add>, %183, %cst_77 [1] : vector<8x32xf32> to vector<8xf32>
    %185 = vector.shape_cast %184 : vector<8xf32> to vector<8x1xf32>
    %cst_78 = arith.constant 3.200000e+01 : f32
    %186 = vector.broadcast %cst_78 : f32 to vector<8x1xf32>
    %187 = arith.divf %185, %186 : vector<8x1xf32>
    %cst_79 = arith.constant 9.99999996E-13 : f32
    %188 = vector.broadcast %cst_79 : f32 to vector<8x1xf32>
    %189 = arith.addf %187, %188 : vector<8x1xf32>
    %190 = math.rsqrt %189 : vector<8x1xf32>
    %191 = vector.broadcast %190 : vector<8x1xf32> to vector<8x32xf32>
    %192 = arith.mulf %182, %191 : vector<8x32xf32>
    %193 = vector.broadcast %175 : vector<1x32xf32> to vector<8x32xf32>
    %194 = arith.mulf %192, %193 : vector<8x32xf32>
    %195 = vector.broadcast %176 : vector<1x32xf32> to vector<8x32xf32>
    %196 = arith.addf %194, %195 : vector<8x32xf32>
    %c0_80 = arith.constant 0 : index
    %c0_81 = arith.constant 0 : index
    %197 = vector.load %arg17[%c0_80, %c0_81] : memref<32x96xf32, #tpu.memory_space<vmem>>, vector<32x96xf32>
    %cst_82 = arith.constant dense<0.000000e+00> : vector<8x96xf32>
    %198 = tpu.matmul %196, %197, %cst_82 {dimension_numbers = #tpu.dot_dimension_numbers<[1], [0], [0], [1], [0, 0, 1, 1], [], []>} : vector<8x32xf32>, vector<32x96xf32>, vector<8x96xf32> -> vector<8x96xf32>
    %c0_83 = arith.constant 0 : index
    %c0_84 = arith.constant 0 : index
    %199 = vector.load %arg18[%c0_83, %c0_84] : memref<1x96xf32, #tpu.memory_space<vmem>>, vector<1x96xf32>
    %200 = vector.broadcast %199 : vector<1x96xf32> to vector<8x96xf32>
    %201 = arith.addf %198, %200 : vector<8x96xf32>
    %c0_85 = arith.constant 0 : index
    %c0_86 = arith.constant 0 : index
    %202 = vector.load %arg19[%c0_85, %c0_86] : memref<32x32xf32, #tpu.memory_space<vmem>>, vector<32x32xf32>
    %cst_87 = arith.constant 0.000000e+00 : f32
    %203 = vector.broadcast %cst_87 : f32 to vector<8x32xf32>
    %204 = vector.extract_strided_slice %201 {offsets = [0, 0], sizes = [8, 8], strides = [1, 1]} : vector<8x96xf32> to vector<8x8xf32>
    %205 = vector.extract_strided_slice %201 {offsets = [0, 32], sizes = [8, 8], strides = [1, 1]} : vector<8x96xf32> to vector<8x8xf32>
    %206 = vector.extract_strided_slice %201 {offsets = [0, 64], sizes = [8, 8], strides = [1, 1]} : vector<8x96xf32> to vector<8x8xf32>
    %cst_88 = arith.constant dense<0.000000e+00> : vector<8x8xf32>
    %207 = tpu.matmul %204, %205, %cst_88 {dimension_numbers = #tpu.dot_dimension_numbers<[1], [1], [0], [0], [0, 0, 1, 0], [], []>} : vector<8x8xf32>, vector<8x8xf32>, vector<8x8xf32> -> vector<8x8xf32>
    %cst_89 = arith.constant 0.353553385 : f32
    %208 = vector.broadcast %cst_89 : f32 to vector<8x8xf32>
    %209 = arith.mulf %207, %208 : vector<8x8xf32>
    %210 = vector.broadcast %6 : vector<1x8xf32> to vector<8x8xf32>
    %211 = arith.addf %209, %210 : vector<8x8xf32>
    %cst_90 = arith.constant dense<0xFF800000> : vector<8xf32>
    %212 = vector.multi_reduction <maximumf>, %211, %cst_90 [1] : vector<8x8xf32> to vector<8xf32>
    %213 = vector.shape_cast %212 : vector<8xf32> to vector<8x1xf32>
    %214 = vector.broadcast %213 : vector<8x1xf32> to vector<8x8xf32>
    %215 = arith.subf %211, %214 : vector<8x8xf32>
    %216 = math.exp %215 : vector<8x8xf32>
    %cst_91 = arith.constant dense<0.000000e+00> : vector<8xf32>
    %217 = vector.multi_reduction <add>, %216, %cst_91 [1] : vector<8x8xf32> to vector<8xf32>
    %218 = vector.shape_cast %217 : vector<8xf32> to vector<8x1xf32>
    %219 = tpu.reciprocal %218 {approx = true} : vector<8x1xf32> -> vector<8x1xf32>
    %220 = vector.broadcast %219 : vector<8x1xf32> to vector<8x8xf32>
    %221 = arith.mulf %216, %220 : vector<8x8xf32>
    %cst_92 = arith.constant dense<0.000000e+00> : vector<8x8xf32>
    %222 = tpu.matmul %221, %206, %cst_92 {dimension_numbers = #tpu.dot_dimension_numbers<[1], [0], [0], [1], [0, 0, 1, 1], [], []>} : vector<8x8xf32>, vector<8x8xf32>, vector<8x8xf32> -> vector<8x8xf32>
    %223 = vector.extract_strided_slice %202 {offsets = [0, 0], sizes = [8, 32], strides = [1, 1]} : vector<32x32xf32> to vector<8x32xf32>
    %cst_93 = arith.constant dense<0.000000e+00> : vector<8x32xf32>
    %224 = tpu.matmul %222, %223, %cst_93 {dimension_numbers = #tpu.dot_dimension_numbers<[1], [0], [0], [1], [0, 0, 1, 1], [], []>} : vector<8x8xf32>, vector<8x32xf32>, vector<8x32xf32> -> vector<8x32xf32>
    %225 = arith.addf %203, %224 : vector<8x32xf32>
    %226 = vector.extract_strided_slice %201 {offsets = [0, 8], sizes = [8, 8], strides = [1, 1]} : vector<8x96xf32> to vector<8x8xf32>
    %227 = vector.extract_strided_slice %201 {offsets = [0, 40], sizes = [8, 8], strides = [1, 1]} : vector<8x96xf32> to vector<8x8xf32>
    %228 = vector.extract_strided_slice %201 {offsets = [0, 72], sizes = [8, 8], strides = [1, 1]} : vector<8x96xf32> to vector<8x8xf32>
    %cst_94 = arith.constant dense<0.000000e+00> : vector<8x8xf32>
    %229 = tpu.matmul %226, %227, %cst_94 {dimension_numbers = #tpu.dot_dimension_numbers<[1], [1], [0], [0], [0, 0, 1, 0], [], []>} : vector<8x8xf32>, vector<8x8xf32>, vector<8x8xf32> -> vector<8x8xf32>
    %cst_95 = arith.constant 0.353553385 : f32
    %230 = vector.broadcast %cst_95 : f32 to vector<8x8xf32>
    %231 = arith.mulf %229, %230 : vector<8x8xf32>
    %232 = vector.broadcast %6 : vector<1x8xf32> to vector<8x8xf32>
    %233 = arith.addf %231, %232 : vector<8x8xf32>
    %cst_96 = arith.constant dense<0xFF800000> : vector<8xf32>
    %234 = vector.multi_reduction <maximumf>, %233, %cst_96 [1] : vector<8x8xf32> to vector<8xf32>
    %235 = vector.shape_cast %234 : vector<8xf32> to vector<8x1xf32>
    %236 = vector.broadcast %235 : vector<8x1xf32> to vector<8x8xf32>
    %237 = arith.subf %233, %236 : vector<8x8xf32>
    %238 = math.exp %237 : vector<8x8xf32>
    %cst_97 = arith.constant dense<0.000000e+00> : vector<8xf32>
    %239 = vector.multi_reduction <add>, %238, %cst_97 [1] : vector<8x8xf32> to vector<8xf32>
    %240 = vector.shape_cast %239 : vector<8xf32> to vector<8x1xf32>
    %241 = tpu.reciprocal %240 {approx = true} : vector<8x1xf32> -> vector<8x1xf32>
    %242 = vector.broadcast %241 : vector<8x1xf32> to vector<8x8xf32>
    %243 = arith.mulf %238, %242 : vector<8x8xf32>
    %cst_98 = arith.constant dense<0.000000e+00> : vector<8x8xf32>
    %244 = tpu.matmul %243, %228, %cst_98 {dimension_numbers = #tpu.dot_dimension_numbers<[1], [0], [0], [1], [0, 0, 1, 1], [], []>} : vector<8x8xf32>, vector<8x8xf32>, vector<8x8xf32> -> vector<8x8xf32>
    %245 = vector.extract_strided_slice %202 {offsets = [8, 0], sizes = [8, 32], strides = [1, 1]} : vector<32x32xf32> to vector<8x32xf32>
    %cst_99 = arith.constant dense<0.000000e+00> : vector<8x32xf32>
    %246 = tpu.matmul %244, %245, %cst_99 {dimension_numbers = #tpu.dot_dimension_numbers<[1], [0], [0], [1], [0, 0, 1, 1], [], []>} : vector<8x8xf32>, vector<8x32xf32>, vector<8x32xf32> -> vector<8x32xf32>
    %247 = arith.addf %225, %246 : vector<8x32xf32>
    %248 = vector.extract_strided_slice %201 {offsets = [0, 16], sizes = [8, 8], strides = [1, 1]} : vector<8x96xf32> to vector<8x8xf32>
    %249 = vector.extract_strided_slice %201 {offsets = [0, 48], sizes = [8, 8], strides = [1, 1]} : vector<8x96xf32> to vector<8x8xf32>
    %250 = vector.extract_strided_slice %201 {offsets = [0, 80], sizes = [8, 8], strides = [1, 1]} : vector<8x96xf32> to vector<8x8xf32>
    %cst_100 = arith.constant dense<0.000000e+00> : vector<8x8xf32>
    %251 = tpu.matmul %248, %249, %cst_100 {dimension_numbers = #tpu.dot_dimension_numbers<[1], [1], [0], [0], [0, 0, 1, 0], [], []>} : vector<8x8xf32>, vector<8x8xf32>, vector<8x8xf32> -> vector<8x8xf32>
    %cst_101 = arith.constant 0.353553385 : f32
    %252 = vector.broadcast %cst_101 : f32 to vector<8x8xf32>
    %253 = arith.mulf %251, %252 : vector<8x8xf32>
    %254 = vector.broadcast %6 : vector<1x8xf32> to vector<8x8xf32>
    %255 = arith.addf %253, %254 : vector<8x8xf32>
    %cst_102 = arith.constant dense<0xFF800000> : vector<8xf32>
    %256 = vector.multi_reduction <maximumf>, %255, %cst_102 [1] : vector<8x8xf32> to vector<8xf32>
    %257 = vector.shape_cast %256 : vector<8xf32> to vector<8x1xf32>
    %258 = vector.broadcast %257 : vector<8x1xf32> to vector<8x8xf32>
    %259 = arith.subf %255, %258 : vector<8x8xf32>
    %260 = math.exp %259 : vector<8x8xf32>
    %cst_103 = arith.constant dense<0.000000e+00> : vector<8xf32>
    %261 = vector.multi_reduction <add>, %260, %cst_103 [1] : vector<8x8xf32> to vector<8xf32>
    %262 = vector.shape_cast %261 : vector<8xf32> to vector<8x1xf32>
    %263 = tpu.reciprocal %262 {approx = true} : vector<8x1xf32> -> vector<8x1xf32>
    %264 = vector.broadcast %263 : vector<8x1xf32> to vector<8x8xf32>
    %265 = arith.mulf %260, %264 : vector<8x8xf32>
    %cst_104 = arith.constant dense<0.000000e+00> : vector<8x8xf32>
    %266 = tpu.matmul %265, %250, %cst_104 {dimension_numbers = #tpu.dot_dimension_numbers<[1], [0], [0], [1], [0, 0, 1, 1], [], []>} : vector<8x8xf32>, vector<8x8xf32>, vector<8x8xf32> -> vector<8x8xf32>
    %267 = vector.extract_strided_slice %202 {offsets = [16, 0], sizes = [8, 32], strides = [1, 1]} : vector<32x32xf32> to vector<8x32xf32>
    %cst_105 = arith.constant dense<0.000000e+00> : vector<8x32xf32>
    %268 = tpu.matmul %266, %267, %cst_105 {dimension_numbers = #tpu.dot_dimension_numbers<[1], [0], [0], [1], [0, 0, 1, 1], [], []>} : vector<8x8xf32>, vector<8x32xf32>, vector<8x32xf32> -> vector<8x32xf32>
    %269 = arith.addf %247, %268 : vector<8x32xf32>
    %270 = vector.extract_strided_slice %201 {offsets = [0, 24], sizes = [8, 8], strides = [1, 1]} : vector<8x96xf32> to vector<8x8xf32>
    %271 = vector.extract_strided_slice %201 {offsets = [0, 56], sizes = [8, 8], strides = [1, 1]} : vector<8x96xf32> to vector<8x8xf32>
    %272 = vector.extract_strided_slice %201 {offsets = [0, 88], sizes = [8, 8], strides = [1, 1]} : vector<8x96xf32> to vector<8x8xf32>
    %cst_106 = arith.constant dense<0.000000e+00> : vector<8x8xf32>
    %273 = tpu.matmul %270, %271, %cst_106 {dimension_numbers = #tpu.dot_dimension_numbers<[1], [1], [0], [0], [0, 0, 1, 0], [], []>} : vector<8x8xf32>, vector<8x8xf32>, vector<8x8xf32> -> vector<8x8xf32>
    %cst_107 = arith.constant 0.353553385 : f32
    %274 = vector.broadcast %cst_107 : f32 to vector<8x8xf32>
    %275 = arith.mulf %273, %274 : vector<8x8xf32>
    %276 = vector.broadcast %6 : vector<1x8xf32> to vector<8x8xf32>
    %277 = arith.addf %275, %276 : vector<8x8xf32>
    %cst_108 = arith.constant dense<0xFF800000> : vector<8xf32>
    %278 = vector.multi_reduction <maximumf>, %277, %cst_108 [1] : vector<8x8xf32> to vector<8xf32>
    %279 = vector.shape_cast %278 : vector<8xf32> to vector<8x1xf32>
    %280 = vector.broadcast %279 : vector<8x1xf32> to vector<8x8xf32>
    %281 = arith.subf %277, %280 : vector<8x8xf32>
    %282 = math.exp %281 : vector<8x8xf32>
    %cst_109 = arith.constant dense<0.000000e+00> : vector<8xf32>
    %283 = vector.multi_reduction <add>, %282, %cst_109 [1] : vector<8x8xf32> to vector<8xf32>
    %284 = vector.shape_cast %283 : vector<8xf32> to vector<8x1xf32>
    %285 = tpu.reciprocal %284 {approx = true} : vector<8x1xf32> -> vector<8x1xf32>
    %286 = vector.broadcast %285 : vector<8x1xf32> to vector<8x8xf32>
    %287 = arith.mulf %282, %286 : vector<8x8xf32>
    %cst_110 = arith.constant dense<0.000000e+00> : vector<8x8xf32>
    %288 = tpu.matmul %287, %272, %cst_110 {dimension_numbers = #tpu.dot_dimension_numbers<[1], [0], [0], [1], [0, 0, 1, 1], [], []>} : vector<8x8xf32>, vector<8x8xf32>, vector<8x8xf32> -> vector<8x8xf32>
    %289 = vector.extract_strided_slice %202 {offsets = [24, 0], sizes = [8, 32], strides = [1, 1]} : vector<32x32xf32> to vector<8x32xf32>
    %cst_111 = arith.constant dense<0.000000e+00> : vector<8x32xf32>
    %290 = tpu.matmul %288, %289, %cst_111 {dimension_numbers = #tpu.dot_dimension_numbers<[1], [0], [0], [1], [0, 0, 1, 1], [], []>} : vector<8x8xf32>, vector<8x32xf32>, vector<8x32xf32> -> vector<8x32xf32>
    %291 = arith.addf %269, %290 : vector<8x32xf32>
    %c0_112 = arith.constant 0 : index
    %c0_113 = arith.constant 0 : index
    %292 = vector.load %arg20[%c0_112, %c0_113] : memref<1x32xf32, #tpu.memory_space<vmem>>, vector<1x32xf32>
    %293 = vector.broadcast %292 : vector<1x32xf32> to vector<8x32xf32>
    %294 = arith.addf %291, %293 : vector<8x32xf32>
    %295 = arith.addf %196, %294 : vector<8x32xf32>
    %c0_114 = arith.constant 0 : index
    %c0_115 = arith.constant 0 : index
    %296 = vector.load %arg21[%c0_114, %c0_115] : memref<1x32xf32, #tpu.memory_space<vmem>>, vector<1x32xf32>
    %c0_116 = arith.constant 0 : index
    %c0_117 = arith.constant 0 : index
    %297 = vector.load %arg22[%c0_116, %c0_117] : memref<1x32xf32, #tpu.memory_space<vmem>>, vector<1x32xf32>
    %cst_118 = arith.constant dense<0.000000e+00> : vector<8xf32>
    %298 = vector.multi_reduction <add>, %295, %cst_118 [1] : vector<8x32xf32> to vector<8xf32>
    %299 = vector.shape_cast %298 : vector<8xf32> to vector<8x1xf32>
    %cst_119 = arith.constant 3.200000e+01 : f32
    %300 = vector.broadcast %cst_119 : f32 to vector<8x1xf32>
    %301 = arith.divf %299, %300 : vector<8x1xf32>
    %302 = vector.broadcast %301 : vector<8x1xf32> to vector<8x32xf32>
    %303 = arith.subf %295, %302 : vector<8x32xf32>
    %304 = arith.mulf %303, %303 : vector<8x32xf32>
    %cst_120 = arith.constant dense<0.000000e+00> : vector<8xf32>
    %305 = vector.multi_reduction <add>, %304, %cst_120 [1] : vector<8x32xf32> to vector<8xf32>
    %306 = vector.shape_cast %305 : vector<8xf32> to vector<8x1xf32>
    %cst_121 = arith.constant 3.200000e+01 : f32
    %307 = vector.broadcast %cst_121 : f32 to vector<8x1xf32>
    %308 = arith.divf %306, %307 : vector<8x1xf32>
    %cst_122 = arith.constant 9.99999996E-13 : f32
    %309 = vector.broadcast %cst_122 : f32 to vector<8x1xf32>
    %310 = arith.addf %308, %309 : vector<8x1xf32>
    %311 = math.rsqrt %310 : vector<8x1xf32>
    %312 = vector.broadcast %311 : vector<8x1xf32> to vector<8x32xf32>
    %313 = arith.mulf %303, %312 : vector<8x32xf32>
    %314 = vector.broadcast %296 : vector<1x32xf32> to vector<8x32xf32>
    %315 = arith.mulf %313, %314 : vector<8x32xf32>
    %316 = vector.broadcast %297 : vector<1x32xf32> to vector<8x32xf32>
    %317 = arith.addf %315, %316 : vector<8x32xf32>
    %c0_123 = arith.constant 0 : index
    %c0_124 = arith.constant 0 : index
    %318 = vector.load %arg23[%c0_123, %c0_124] : memref<32x64xf32, #tpu.memory_space<vmem>>, vector<32x64xf32>
    %cst_125 = arith.constant dense<0.000000e+00> : vector<8x64xf32>
    %319 = tpu.matmul %317, %318, %cst_125 {dimension_numbers = #tpu.dot_dimension_numbers<[1], [0], [0], [1], [0, 0, 1, 1], [], []>} : vector<8x32xf32>, vector<32x64xf32>, vector<8x64xf32> -> vector<8x64xf32>
    %c0_126 = arith.constant 0 : index
    %c0_127 = arith.constant 0 : index
    %320 = vector.load %arg24[%c0_126, %c0_127] : memref<1x64xf32, #tpu.memory_space<vmem>>, vector<1x64xf32>
    %321 = vector.broadcast %320 : vector<1x64xf32> to vector<8x64xf32>
    %322 = arith.addf %319, %321 : vector<8x64xf32>
    %323 = arith.mulf %322, %322 : vector<8x64xf32>
    %324 = arith.mulf %322, %323 : vector<8x64xf32>
    %cst_128 = arith.constant 4.471500e-02 : f32
    %325 = vector.broadcast %cst_128 : f32 to vector<8x64xf32>
    %326 = arith.mulf %325, %324 : vector<8x64xf32>
    %327 = arith.addf %322, %326 : vector<8x64xf32>
    %cst_129 = arith.constant 0.797884583 : f32
    %328 = vector.broadcast %cst_129 : f32 to vector<8x64xf32>
    %329 = arith.mulf %328, %327 : vector<8x64xf32>
    %330 = math.tanh %329 : vector<8x64xf32>
    %cst_130 = arith.constant 1.000000e+00 : f32
    %331 = vector.broadcast %cst_130 : f32 to vector<8x64xf32>
    %332 = arith.addf %331, %330 : vector<8x64xf32>
    %cst_131 = arith.constant 5.000000e-01 : f32
    %333 = vector.broadcast %cst_131 : f32 to vector<8x64xf32>
    %334 = arith.mulf %333, %332 : vector<8x64xf32>
    %335 = arith.mulf %322, %334 : vector<8x64xf32>
    %c0_132 = arith.constant 0 : index
    %c0_133 = arith.constant 0 : index
    %336 = vector.load %arg25[%c0_132, %c0_133] : memref<64x32xf32, #tpu.memory_space<vmem>>, vector<64x32xf32>
    %cst_134 = arith.constant dense<0.000000e+00> : vector<8x32xf32>
    %337 = tpu.matmul %335, %336, %cst_134 {dimension_numbers = #tpu.dot_dimension_numbers<[1], [0], [0], [1], [0, 0, 1, 1], [], []>} : vector<8x64xf32>, vector<64x32xf32>, vector<8x32xf32> -> vector<8x32xf32>
    %c0_135 = arith.constant 0 : index
    %c0_136 = arith.constant 0 : index
    %338 = vector.load %arg26[%c0_135, %c0_136] : memref<1x32xf32, #tpu.memory_space<vmem>>, vector<1x32xf32>
    %339 = vector.broadcast %338 : vector<1x32xf32> to vector<8x32xf32>
    %340 = arith.addf %337, %339 : vector<8x32xf32>
    %341 = arith.addf %317, %340 : vector<8x32xf32>
    %c0_137 = arith.constant 0 : index
    %c0_138 = arith.constant 0 : index
    %342 = vector.load %arg27[%c0_137, %c0_138] : memref<1x32xf32, #tpu.memory_space<vmem>>, vector<1x32xf32>
    %c0_139 = arith.constant 0 : index
    %c0_140 = arith.constant 0 : index
    %343 = vector.load %arg28[%c0_139, %c0_140] : memref<1x32xf32, #tpu.memory_space<vmem>>, vector<1x32xf32>
    %cst_141 = arith.constant dense<0.000000e+00> : vector<8xf32>
    %344 = vector.multi_reduction <add>, %341, %cst_141 [1] : vector<8x32xf32> to vector<8xf32>
    %345 = vector.shape_cast %344 : vector<8xf32> to vector<8x1xf32>
    %cst_142 = arith.constant 3.200000e+01 : f32
    %346 = vector.broadcast %cst_142 : f32 to vector<8x1xf32>
    %347 = arith.divf %345, %346 : vector<8x1xf32>
    %348 = vector.broadcast %347 : vector<8x1xf32> to vector<8x32xf32>
    %349 = arith.subf %341, %348 : vector<8x32xf32>
    %350 = arith.mulf %349, %349 : vector<8x32xf32>
    %cst_143 = arith.constant dense<0.000000e+00> : vector<8xf32>
    %351 = vector.multi_reduction <add>, %350, %cst_143 [1] : vector<8x32xf32> to vector<8xf32>
    %352 = vector.shape_cast %351 : vector<8xf32> to vector<8x1xf32>
    %cst_144 = arith.constant 3.200000e+01 : f32
    %353 = vector.broadcast %cst_144 : f32 to vector<8x1xf32>
    %354 = arith.divf %352, %353 : vector<8x1xf32>
    %cst_145 = arith.constant 9.99999996E-13 : f32
    %355 = vector.broadcast %cst_145 : f32 to vector<8x1xf32>
    %356 = arith.addf %354, %355 : vector<8x1xf32>
    %357 = math.rsqrt %356 : vector<8x1xf32>
    %358 = vector.broadcast %357 : vector<8x1xf32> to vector<8x32xf32>
    %359 = arith.mulf %349, %358 : vector<8x32xf32>
    %360 = vector.broadcast %342 : vector<1x32xf32> to vector<8x32xf32>
    %361 = arith.mulf %359, %360 : vector<8x32xf32>
    %362 = vector.broadcast %343 : vector<1x32xf32> to vector<8x32xf32>
    %363 = arith.addf %361, %362 : vector<8x32xf32>
    %364 = vector.extract_strided_slice %363 {offsets = [0, 0], sizes = [1, 32], strides = [1, 1]} : vector<8x32xf32> to vector<1x32xf32>
    %c0_146 = arith.constant 0 : index
    %c0_147 = arith.constant 0 : index
    %365 = vector.load %arg29[%c0_146, %c0_147] : memref<32x32xf32, #tpu.memory_space<vmem>>, vector<32x32xf32>
    %cst_148 = arith.constant dense<0.000000e+00> : vector<1x32xf32>
    %366 = tpu.matmul %364, %365, %cst_148 {dimension_numbers = #tpu.dot_dimension_numbers<[1], [0], [0], [1], [0, 0, 1, 1], [], []>} : vector<1x32xf32>, vector<32x32xf32>, vector<1x32xf32> -> vector<1x32xf32>
    %c0_149 = arith.constant 0 : index
    %c0_150 = arith.constant 0 : index
    %367 = vector.load %arg30[%c0_149, %c0_150] : memref<1x32xf32, #tpu.memory_space<vmem>>, vector<1x32xf32>
    %368 = arith.addf %366, %367 : vector<1x32xf32>
    %369 = math.tanh %368 : vector<1x32xf32>
    %c0_151 = arith.constant 0 : index
    %c0_152 = arith.constant 0 : index
    %370 = vector.load %arg31[%c0_151, %c0_152] : memref<32x1xf32, #tpu.memory_space<vmem>>, vector<32x1xf32>
    %cst_153 = arith.constant dense<0.000000e+00> : vector<1x1xf32>
    %371 = tpu.matmul %369, %370, %cst_153 {dimension_numbers = #tpu.dot_dimension_numbers<[1], [0], [0], [1], [0, 0, 1, 1], [], []>} : vector<1x32xf32>, vector<32x1xf32>, vector<1x1xf32> -> vector<1x1xf32>
    %c0_154 = arith.constant 0 : index
    %c0_155 = arith.constant 0 : index
    %372 = vector.load %arg32[%c0_154, %c0_155] : memref<1x1xf32, #tpu.memory_space<vmem>>, vector<1x1xf32>
    %373 = arith.addf %371, %372 : vector<1x1xf32>
    %c0_156 = arith.constant 0 : index
    %c0_157 = arith.constant 0 : index
    %c0_158 = arith.constant 0 : index
    %374 = vector.load %arg33[%c0_156, %c0_157, %c0_158] : memref<1x1x1xf32, #tpu.memory_space<vmem>>, vector<1x1x1xf32>
    %375 = vector.shape_cast %374 : vector<1x1x1xf32> to vector<1x1xf32>
    %376 = vector.shape_cast %373 : vector<1x1xf32> to vector<1x1x1xf32>
    tpu.vector_store %arg33[%c0_156, %c0_157, %c0_158], %376 {strides = array<i32>} : memref<1x1x1xf32, #tpu.memory_space<vmem>>, vector<1x1x1xf32>,
    return
  }
  func.func @transform_0(%arg0: i32) -> (i32, i32, i32) {
    %c0_i32 = arith.constant 0 : i32
    %c0_i32_0 = arith.constant 0 : i32
    %c0_i32_1 = arith.constant 0 : i32
    return %arg0, %c0_i32, %c0_i32_0 : i32, i32, i32
  }
  func.func @transform_1(%arg0: i32) -> (i32, i32) {
    %c0_i32 = arith.constant 0 : i32
    %c0_i32_0 = arith.constant 0 : i32
    return %arg0, %c0_i32 : i32, i32
  }
  func.func @transform_2(%arg0: i32) -> (i32, i32) {
    %c0_i32 = arith.constant 0 : i32
    %c0_i32_0 = arith.constant 0 : i32
    %c0_i32_1 = arith.constant 0 : i32
    return %c0_i32, %c0_i32_0 : i32, i32
  }
  func.func @transform_3(%arg0: i32) -> (i32, i32) {
    %c0_i32 = arith.constant 0 : i32
    %c0_i32_0 = arith.constant 0 : i32
    %c0_i32_1 = arith.constant 0 : i32
    return %c0_i32, %c0_i32_0 : i32, i32
  }
  func.func @transform_4(%arg0: i32) -> (i32, i32) {
    %c0_i32 = arith.constant 0 : i32
    %c0_i32_0 = arith.constant 0 : i32
    %c0_i32_1 = arith.constant 0 : i32
    return %c0_i32, %c0_i32_0 : i32, i32
  }
  func.func @transform_5(%arg0: i32) -> (i32, i32) {
    %c0_i32 = arith.constant 0 : i32
    %c0_i32_0 = arith.constant 0 : i32
    %c0_i32_1 = arith.constant 0 : i32
    return %c0_i32, %c0_i32_0 : i32, i32
  }
  func.func @transform_6(%arg0: i32) -> (i32, i32) {
    %c0_i32 = arith.constant 0 : i32
    %c0_i32_0 = arith.constant 0 : i32
    %c0_i32_1 = arith.constant 0 : i32
    return %c0_i32, %c0_i32_0 : i32, i32
  }
  func.func @transform_7(%arg0: i32) -> (i32, i32) {
    %c0_i32 = arith.constant 0 : i32
    %c0_i32_0 = arith.constant 0 : i32
    %c0_i32_1 = arith.constant 0 : i32
    return %c0_i32, %c0_i32_0 : i32, i32
  }
  func.func @transform_8(%arg0: i32) -> (i32, i32) {
    %c0_i32 = arith.constant 0 : i32
    %c0_i32_0 = arith.constant 0 : i32
    %c0_i32_1 = arith.constant 0 : i32
    return %c0_i32, %c0_i32_0 : i32, i32
  }
  func.func @transform_9(%arg0: i32) -> (i32, i32) {
    %c0_i32 = arith.constant 0 : i32
    %c0_i32_0 = arith.constant 0 : i32
    %c0_i32_1 = arith.constant 0 : i32
    return %c0_i32, %c0_i32_0 : i32, i32
  }
  func.func @transform_10(%arg0: i32) -> (i32, i32) {
    %c0_i32 = arith.constant 0 : i32
    %c0_i32_0 = arith.constant 0 : i32
    %c0_i32_1 = arith.constant 0 : i32
    return %c0_i32, %c0_i32_0 : i32, i32
  }
  func.func @transform_11(%arg0: i32) -> (i32, i32) {
    %c0_i32 = arith.constant 0 : i32
    %c0_i32_0 = arith.constant 0 : i32
    %c0_i32_1 = arith.constant 0 : i32
    return %c0_i32, %c0_i32_0 : i32, i32
  }
  func.func @transform_12(%arg0: i32) -> (i32, i32) {
    %c0_i32 = arith.constant 0 : i32
    %c0_i32_0 = arith.constant 0 : i32
    %c0_i32_1 = arith.constant 0 : i32
    return %c0_i32, %c0_i32_0 : i32, i32
  }
  func.func @transform_13(%arg0: i32) -> (i32, i32) {
    %c0_i32 = arith.constant 0 : i32
    %c0_i32_0 = arith.constant 0 : i32
    %c0_i32_1 = arith.constant 0 : i32
    return %c0_i32, %c0_i32_0 : i32, i32
  }
  func.func @transform_14(%arg0: i32) -> (i32, i32) {
    %c0_i32 = arith.constant 0 : i32
    %c0_i32_0 = arith.constant 0 : i32
    %c0_i32_1 = arith.constant 0 : i32
    return %c0_i32, %c0_i32_0 : i32, i32
  }
  func.func @transform_15(%arg0: i32) -> (i32, i32) {
    %c0_i32 = arith.constant 0 : i32
    %c0_i32_0 = arith.constant 0 : i32
    %c0_i32_1 = arith.constant 0 : i32
    return %c0_i32, %c0_i32_0 : i32, i32
  }
  func.func @transform_16(%arg0: i32) -> (i32, i32) {
    %c0_i32 = arith.constant 0 : i32
    %c0_i32_0 = arith.constant 0 : i32
    %c0_i32_1 = arith.constant 0 : i32
    return %c0_i32, %c0_i32_0 : i32, i32
  }
  func.func @transform_17(%arg0: i32) -> (i32, i32) {
    %c0_i32 = arith.constant 0 : i32
    %c0_i32_0 = arith.constant 0 : i32
    %c0_i32_1 = arith.constant 0 : i32
    return %c0_i32, %c0_i32_0 : i32, i32
  }
  func.func @transform_18(%arg0: i32) -> (i32, i32) {
    %c0_i32 = arith.constant 0 : i32
    %c0_i32_0 = arith.constant 0 : i32
    %c0_i32_1 = arith.constant 0 : i32
    return %c0_i32, %c0_i32_0 : i32, i32
  }
  func.func @transform_19(%arg0: i32) -> (i32, i32) {
    %c0_i32 = arith.constant 0 : i32
    %c0_i32_0 = arith.constant 0 : i32
    %c0_i32_1 = arith.constant 0 : i32
    return %c0_i32, %c0_i32_0 : i32, i32
  }
  func.func @transform_20(%arg0: i32) -> (i32, i32) {
    %c0_i32 = arith.constant 0 : i32
    %c0_i32_0 = arith.constant 0 : i32
    %c0_i32_1 = arith.constant 0 : i32
    return %c0_i32, %c0_i32_0 : i32, i32
  }
  func.func @transform_21(%arg0: i32) -> (i32, i32) {
    %c0_i32 = arith.constant 0 : i32
    %c0_i32_0 = arith.constant 0 : i32
    %c0_i32_1 = arith.constant 0 : i32
    return %c0_i32, %c0_i32_0 : i32, i32
  }
  func.func @transform_22(%arg0: i32) -> (i32, i32) {
    %c0_i32 = arith.constant 0 : i32
    %c0_i32_0 = arith.constant 0 : i32
    %c0_i32_1 = arith.constant 0 : i32
    return %c0_i32, %c0_i32_0 : i32, i32
  }
  func.func @transform_23(%arg0: i32) -> (i32, i32) {
    %c0_i32 = arith.constant 0 : i32
    %c0_i32_0 = arith.constant 0 : i32
    %c0_i32_1 = arith.constant 0 : i32
    return %c0_i32, %c0_i32_0 : i32, i32
  }
  func.func @transform_24(%arg0: i32) -> (i32, i32) {
    %c0_i32 = arith.constant 0 : i32
    %c0_i32_0 = arith.constant 0 : i32
    %c0_i32_1 = arith.constant 0 : i32
    return %c0_i32, %c0_i32_0 : i32, i32
  }
  func.func @transform_25(%arg0: i32) -> (i32, i32) {
    %c0_i32 = arith.constant 0 : i32
    %c0_i32_0 = arith.constant 0 : i32
    %c0_i32_1 = arith.constant 0 : i32
    return %c0_i32, %c0_i32_0 : i32, i32
  }
  func.func @transform_26(%arg0: i32) -> (i32, i32) {
    %c0_i32 = arith.constant 0 : i32
    %c0_i32_0 = arith.constant 0 : i32
    %c0_i32_1 = arith.constant 0 : i32
    return %c0_i32, %c0_i32_0 : i32, i32
  }
  func.func @transform_27(%arg0: i32) -> (i32, i32) {
    %c0_i32 = arith.constant 0 : i32
    %c0_i32_0 = arith.constant 0 : i32
    %c0_i32_1 = arith.constant 0 : i32
    return %c0_i32, %c0_i32_0 : i32, i32
  }
  func.func @transform_28(%arg0: i32) -> (i32, i32) {
    %c0_i32 = arith.constant 0 : i32
    %c0_i32_0 = arith.constant 0 : i32
    %c0_i32_1 = arith.constant 0 : i32
    return %c0_i32, %c0_i32_0 : i32, i32
  }
  func.func @transform_29(%arg0: i32) -> (i32, i32) {
    %c0_i32 = arith.constant 0 : i32
    %c0_i32_0 = arith.constant 0 : i32
    %c0_i32_1 = arith.constant 0 : i32
    return %c0_i32, %c0_i32_0 : i32, i32
  }
  func.func @transform_30(%arg0: i32) -> (i32, i32) {
    %c0_i32 = arith.constant 0 : i32
    %c0_i32_0 = arith.constant 0 : i32
    %c0_i32_1 = arith.constant 0 : i32
    return %c0_i32, %c0_i32_0 : i32, i32
  }
  func.func @transform_31(%arg0: i32) -> (i32, i32) {
    %c0_i32 = arith.constant 0 : i32
    %c0_i32_0 = arith.constant 0 : i32
    %c0_i32_1 = arith.constant 0 : i32
    return %c0_i32, %c0_i32_0 : i32, i32
  }
  func.func @transform_32(%arg0: i32) -> (i32, i32, i32) {
    %c0_i32 = arith.constant 0 : i32
    %c0_i32_0 = arith.constant 0 : i32
    %c0_i32_1 = arith.constant 0 : i32
    return %arg0, %c0_i32, %c0_i32_0 : i32, i32, i32
  }
}

</mosaic_0001>

<bundles_post_ra>
// kernel: transformer_forward.1
= control target key start
LH: loop header
LB: loop body
LE: loop exit
PB: predicated region body
PF: predicated region fallthrough
CT: control target
= control target key end

     0   :  { %s4439_s6 = smov 1   ;;  %s4440_s10 = smov 2   ;;  %s4982_s0 = inlined_call_operand.smem [shape: u32[33], index: -1, kind: input, shape index: {}] }
   0x1   :  { %s4494_s5 = sld [smem:[%s4982_s0]]   ;;  %s4441_s14 = smov 3  }
   0x2   :  { %s4499_s9 = sld [smem:[%s4982_s0 + %s4439_s6]]   ;;  %s4442_s18 = smov 4  }
   0x3   :  { %s4504_s13 = sld [smem:[%s4982_s0 + %s4440_s10]]   ;;  %s4443_s22 = smov 5  }
   0x4   :  { %s4509_s17 = sld [smem:[%s4982_s0 + %s4441_s14]]   ;;  %s4444_s26 = smov 6  }
   0x5   :  { %s4514_s21 = sld [smem:[%s4982_s0 + %s4442_s18]]   ;;  %s4445_s30 = smov 7  }
   0x6   :  { %s4519_s25 = sld [smem:[%s4982_s0 + %s4443_s22]]   ;;  %s4446_s4 = smov 8  }
   0x7   :  { %s4524_s29 = sld [smem:[%s4982_s0 + %s4444_s26]]   ;;  %s4447_s10 = smov 9  }
   0x8   :  { %s4529_s3 = sld [smem:[%s4982_s0 + %s4445_s30]]   ;;  %s4448_s15 = smov 10  }
   0x9   :  { %s4534_s8 = sld [smem:[%s4982_s0 + %s4446_s4]]   ;;  %s4449_s20 = smov 11  }
   0xa   :  { %s4539_s14 = sld [smem:[%s4982_s0 + %s4447_s10]]   ;;  %s4450_s26 = smov 12  }
   0xb   :  { %s4544_s19 = sld [smem:[%s4982_s0 + %s4448_s15]]   ;;  %s4451_s1 = smov 13  }
   0xc   :  { %s4549_s24 = sld [smem:[%s4982_s0 + %s4449_s20]]   ;;  %s4452_s7 = smov 14  }
   0xd   :  { %s4554_s30 = sld [smem:[%s4982_s0 + %s4450_s26]]   ;;  %s4453_s15 = smov 15  }
   0xe   :  { %s4559_s6 = sld [smem:[%s4982_s0 + %s4451_s1]]   ;;  %s4454_s22 = smov 16  }
   0xf   :  { %s4564_s12 = sld [smem:[%s4982_s0 + %s4452_s7]]   ;;  %s4455_s28 = smov 17  }
  0x10   :  { %s4569_s20 = sld [smem:[%s4982_s0 + %s4453_s15]]   ;;  %s4456_s7 = smov 18  }
  0x11   :  { %s4574_s27 = sld [smem:[%s4982_s0 + %s4454_s22]]   ;;  %s4457_s15 = smov 19  }
  0x12   :  { %s4579_s4 = sld [smem:[%s4982_s0 + %s4455_s28]]   ;;  %s4458_s22 = smov 20  }
  0x13   :  { %s4459_s28 = smov 21   ;;  %s4470_s23 = smov 32  }
  0x15   :  { %4991 = sst [smem:[#allocation3_spill]] %s4564_s12 }
  0x16   :  { %4992 = sst [smem:[#allocation4_spill]] %s4569_s20 }
  0x17   :  { %4993 = sst [smem:[#allocation5_spill]] %s4574_s27 }
  0x18   :  { %4994 = sst [smem:[#allocation6_spill]] %s4579_s4 }
  0x19   :  { %s4584_s12 = sld [smem:[%s4982_s0 + %s4456_s7]]   ;;  %s4460_s7 = smov 22  }
  0x1a   :  { %s4589_s20 = sld [smem:[%s4982_s0 + %s4457_s15]]   ;;  %s4461_s15 = smov 23  }
  0x1b   :  { %s4594_s27 = sld [smem:[%s4982_s0 + %s4458_s22]]   ;;  %s4462_s22 = smov 24  }
  0x1c   :  { %s4599_s4 = sld [smem:[%s4982_s0 + %s4459_s28]]   ;;  %s4463_s28 = smov 25  }
  0x1f   :  { %4995 = sst [smem:[#allocation7_spill]] %s4584_s12 }
  0x20   :  { %4996 = sst [smem:[#allocation8_spill]] %s4589_s20 }
  0x21   :  { %4997 = sst [smem:[#allocation9_spill]] %s4594_s27 }
  0x22   :  { %4998 = sst [smem:[#allocation10_spill]] %s4599_s4 }
  0x23   :  { %s4604_s12 = sld [smem:[%s4982_s0 + %s4460_s7]]   ;;  %s4464_s7 = smov 26  }
  0x24   :  { %s4609_s20 = sld [smem:[%s4982_s0 + %s4461_s15]]   ;;  %s4465_s15 = smov 27  }
  0x25   :  { %s4614_s27 = sld [smem:[%s4982_s0 + %s4462_s22]]   ;;  %s4466_s22 = smov 28  }
  0x26   :  { %s4619_s4 = sld [smem:[%s4982_s0 + %s4463_s28]]   ;;  %s4467_s28 = smov 29  }
  0x29   :  { %4999 = sst [smem:[#allocation11_spill]] %s4604_s12 }
  0x2a   :  { %5000 = sst [smem:[#allocation12_spill]] %s4609_s20 }
  0x2b   :  { %5001 = sst [smem:[#allocation13_spill]] %s4614_s27 }
  0x2c   :  { %5002 = sst [smem:[#allocation14_spill]] %s4619_s4 }
  0x2d   :  { %s4624_s12 = sld [smem:[%s4982_s0 + %s4464_s7]]   ;;  %s4468_s7 = smov 30  }
  0x2e   :  { %s4629_s20 = sld [smem:[%s4982_s0 + %s4465_s15]]   ;;  %s4469_s15 = smov 31  }
  0x2f   :  { %s4634_s27 = sld [smem:[%s4982_s0 + %s4466_s22]]  }
  0x30   :  { %s4639_s4 = sld [smem:[%s4982_s0 + %s4467_s28]]   ;;  %s4654_s28 = smov 0  }
  0x33   :  { %5003 = sst [smem:[#allocation15_spill]] %s4624_s12 }
  0x34   :  { %5004 = sst [smem:[#allocation16_spill]] %s4629_s20 }
  0x35   :  { %5005 = sst [smem:[#allocation17_spill]] %s4634_s27 }
  0x36   :  { %s4644_s12 = sld [smem:[%s4982_s0 + %s4468_s7]]  }
  0x37   :  { %s3880_s20 = sld [smem:[%s4982_s0 + %s4469_s15]]  }
  0x38   :  { %s4652_s27 = sld [smem:[%s4982_s0 + %s4470_s23]]  }
  0x3d   :  { %v70_v0 = vstv %s3880_s20 }
  0x3e   :  { %71 = vst [vmem:[#allocation2] sm:$0x1] %v70_v0 }
  0x3f LB: > { %s3882_s1 = sadd.s32 4294967295, %s4437_s28   ;;  %p3886_p0 = scmp.ge.s32.totalorder %s4437_s28, 1  ;;  %s4437_s28 = sphi %s4654_s28, %s77_s28  }
  0x40   : > { %p904_p1 = scmp.lt.s32.totalorder %s4437_s28, 3 }
  0x42   : > { %p905_p2 = pnand %p3886_p0, %p904_p1 }
  0x43   : > { %p986_p3 = scmp.lt.s32.totalorder (!%p905_p2), %s3882_s1, 1  ;;  %vm1002_vm0 = vcmask (!%p905_p2), 261120   ;;  %v1031_v8 = vld [vmem:[%s4514_s21] sm:$0xff] (!%p905_p2)  ;;  %v1032_v9 = vld [vmem:[%s4514_s21 + $0x8] sm:$0xff] (!%p905_p2)  ;;  %v1033_v10 = vld [vmem:[%s4514_s21 + $0x10] sm:$0xff] (!%p905_p2)  ;;  %v4471_v11 = vmov (!%p905_p2), 0.0|0.0   ;;  %v1199_v31 = vlaneseq (!%p905_p2) }
  0x44   : > { %908 = sbr.rel (%p905_p2) target bundleno = 8680 (0x21e8), region = 148  ;;  %4268 = vmatprep.subr.bf16.mxu0 (!%p905_p2), %v4471_v11  ;;  %v4269_v12 = vpack.c.bf16 (!%p905_p2), %v1032_v9, %v1031_v8  ;;  %v1034_v13 = vld [vmem:[%s4514_s21 + $0x18] sm:$0xff] (!%p905_p2)  ;;  %vm4472_vm1 = vmmov (!%p905_p2), 0   ;;  %v4473_v14 = vmov (!%p905_p2), 0.0   ;;  %v3888_v20 = vld [vmem:[%s4504_s13] ss:$0 sm:$0xff] (!%p905_p2) }
  0x45   : > { %4052 = vmatprep.mubr.msk.f32.mxu0 (!%p905_p2), %vm4472_vm1, %v4473_v14  ;;  %4055 = vmatprep.subr.mxu1 (!%p905_p2), %v4473_v14  ;;  %v4272_v15 = vpack.c.bf16 (!%p905_p2), %v1034_v13, %v1033_v10  ;;  %v3889_v22 = vld [vmem:[%s4509_s17] ss:$0 sm:$0xff] (!%p905_p2)  ;;  %s4474_s2 = smov (!%p905_p2), 64   ;;  %s4475_s7 = smov (!%p905_p2), 96   ;;  %vm1122_vm2 = vcmask (!%p905_p2), 64512   ;;  %v1200_v33 = vshrl.u32 (!%p905_p2), %v1199_v31, 7 }
  0x46   : > { %4057 = vmatprep.mubr.msk.f32.mxu1 (!%p905_p2), %vm4472_vm1, %v4473_v14  ;;  %4270 = vmatpush3.bf16.msra.mxu0 (!%p905_p2), %v4269_v12  ;;  %v3890_v25 = vld [vmem:[%s4519_s25] ss:$0 sm:$0xff] (!%p905_p2)  ;;  %s4476_s10 = smov (!%p905_p2), 88   ;;  %v4477_v35 = vmov (!%p905_p2), -10000.0   ;;  %s4478_s15 = smov (!%p905_p2), 120   ;;  %vm2233_vm4 = vcmask (!%p905_p2), 523264  }
  0x47   : > { %4271 = vmatprep.subr.bf16.mxu0 (!%p905_p2), %v4471_v11  ;;  %v1201_v34 = vsub.s32 (!%p905_p2), 0, %v1200_v33  ;;  %s4479_s16 = smov (!%p905_p2), 56   ;;  %s4480_s18 = smov (!%p905_p2), 80   ;;  %vm3792_vm5 = vcmask (!%p905_p2), 0  }
  0x48   : > { %s4481_s23 = smov (!%p905_p2), 112   ;;  %s4482_s22 = smov (!%p905_p2), 48  }
  0x49   : > { %s4989_s26 = smov (!%p905_p2), 72  }
  0x4a   : > { %4273 = vmatpush3.bf16.msra.mxu0 (!%p905_p2), %v4272_v15 }
  0x4b   : > { %s5025_s1 = smov (!%p986_p3, %s3882_s1), 1  ;;  %4075 = vmatprep.subr.mxu0 %v4473_v14 }
  0x4c   : > { %s3887_s0 = sshll.u32 %s5025_s1, 3  ;;  %s988_s11 = scalar_lea.vmem %s4494_s5, %s5025_s1 }
  0x4d   : > { %s992_s20 = scalar_lea.vmem %s4499_s9, %s3887_s0  ;;  %v996_v32 = vld [vmem:[%s988_s11] sm:$0x1]  ;;  %s4990_s0 = smov 104  }
  0x4e   : > { %v999_v1 = vld [vmem:[%s992_s20] sm:$0xff]  ;;  %vm997_vm3 = vcmp.gt.s32.totalorder %v996_v32, 0  ;;  %s4988_s20 = smov 40   ;;  %s5006_s11 = sld [smem:[#allocation5_spill]] }
  0x4f   : > { %v1003_v2 = vsel %vm1002_vm0, %v999_v1, 0.0  ;;  %v998_v36 = vsel %vm997_vm3, 0.0, %v4477_v35 }
  0x50   : > { %1004 = vadd.xlane.f32.xlu0 %v1003_v2  ;;  %v4706_v37 = vrot.slane %v998_v36, %v1201_v34  ;;  %v1116_v2 = vld [vmem:[%s4524_s29 + $0x8] sm:$0xff]  ;;  %v1117_v36 = vld [vmem:[%s4524_s29 + $0x10] sm:$0xff] }
  0xdd   : > { %v1005_v3 = vpop.xlane.xlu0 %1004 }
  0xde   : > { %v1007_v4 = vmul.f32 0.03125, %v1005_v3 }
  0xe0   : > { %v1008_v5 = vsub.f32 %v999_v1, %v1007_v4 }
  0xe2   : > { %v1009_v6 = vmul.f32 %v1008_v5, %v1008_v5 }
  0xe4   : > { %v1010_v7 = vsel %vm1002_vm0, %v1009_v6, 0.0  ;;  %v1115_v6 = vld [vmem:[%s4524_s29] sm:$0xff] }
  0xe5   : > { %1011 = vadd.xlane.f32.xlu0 %v1010_v7 }
 0x172   : > { %v1012_v16 = vpop.xlane.xlu0 %1011 }
 0x173   : > { %v1013_v17 = vmul.f32 0.03125, %v1012_v16 }
 0x175   : > { %v1014_v18 = vadd.f32 1e-12, %v1013_v17 }
 0x177   : > { %4383 = vrsqrt.f32 %v1014_v18 }
 0x181   : > { %v4384_v19 = vpop.eup %4383 }
 0x182   : > { %v1016_v21 = vmul.f32 %v4384_v19, %v1008_v5 }
 0x184   : > { %v1023_v23 = vmul.f32 %v3888_v20, %v1016_v21 }
 0x186   : > { %v4682_v24 = vadd.f32 %v3889_v22, %v1023_v23 }
 0x188   : > { %4053 = vmatmul.mubr.msk.f32.vlgmr.msra.gmra.mrb[0].mxu0 %vm1002_vm0, %v4682_v24 }
 0x189   : > { %4077 = vmatprep.mubr.msk.f32.mxu0 %vm4472_vm1, %v4473_v14  ;;  %4076 = vmatpush3.msra.mxu0 %v1116_v2 }
 0x18a   : > { %4085 = vmatprep.subr.mxu0 %v4473_v14 }
 0x25b   : > { %v1111_v26 = vpop.f32.mrb[0].mxu0 }
 0x25c   : > { %v4689_v27 = vadd.f32 %v3890_v25, %v1111_v26  ;;  %v4054_v28 = vpop.f32.mrb[1].mxu0 }
 0x25e   : > { %1216 = vrot.lane.b32.xlu0 %v4689_v27, %s4474_s2  ;;  %1120 = vrot.lane.b32.xlu1 %v4689_v27, %s4475_s7 }
 0x262   : > { %1294 = vrot.lane.b32.xlu0 %v4689_v27, %s4476_s10 }
 0x2d0   : > { %v1121_v29 = vpop.permute.xlu1 %1120  ;;  %v1217_v30 = vpop.permute.xlu0 %1216 }
 0x2d1   : > { %4056 = vmatpush3.xpose.msk.msra.mxu1 %vm1122_vm2, %v1121_v29 }
 0x2d2   : > { %4060 = vmatprep.subr.mxu1 %v4473_v14 }
 0x2d4   : > { %4058 = vmatmul.mubr.msk.f32.vlgmr.msra.gmra.mrb[0].mxu1 %vm1122_vm2, %v4689_v27  ;;  %v1295_v48 = vpop.permute.xlu0 %1294 }
 0x2d5   : > { %4061 = vmatpush3.msra.mxu1 %v1217_v30  ;;  %4062 = vmatprep.mubr.msk.f32.mxu1 %vm4472_vm1, %v4473_v14 }
 0x2d6   : > { %4065 = vmatprep.subr.mxu1 %v4473_v14 }
 0x3a7   : > { %v1193_v38 = vpop.f32.mrb[0].mxu1 }
 0x3a8   : > { %v1197_v39 = vmul.f32 0.35355338, %v1193_v38  ;;  %v4059_v40 = vpop.f32.mrb[1].mxu1 }
 0x3aa   : > { %v1204_v41 = vadd.f32 %v4706_v37, %v1197_v39 }
 0x3ac   : > { %v1205_v42 = vsel %vm1122_vm2, %v1204_v41, -inf }
 0x3ad   : > { %1206 = vmax.xlane.f32.xlu1 %v1205_v42 }
 0x43a   : > { %v1207_v43 = vpop.xlane.xlu1 %1206 }
 0x43b   : > { %v1208_v44 = vsub.f32 %v1204_v41, %v1207_v43 }
 0x43d   : > { %v1209_v45 = vmul.f32 1.442695, %v1208_v44 }
 0x43f   : > { %4385 = vpow2.f32 %v1209_v45 }
 0x449   : > { %v4386_v46 = vpop.eup %4385 }
 0x44a   : > { %v1211_v47 = vsel %vm1122_vm2, %v4386_v46, 0.0 }
 0x44b   : > { %1212 = vadd.xlane.f32.xlu0 %v1211_v47 }
 0x461   : > { %1292 = vrot.lane.b32.xlu0 %v4689_v27, %s4478_s15 }
 0x4d8   : > { %v1213_v49 = vpop.xlane.xlu0 %1212 }
 0x4d9   : > { %4387 = vrcp.f32 %v1213_v49 }
 0x4dc   : > { %v1293_v52 = vpop.permute.xlu0 %1292 }
 0x4e3   : > { %v4388_v50 = vpop.eup %4387 }
 0x4e4   : > { %v1215_v51 = vmul.f32 %v4388_v50, %v4386_v46 }
 0x4e6   : > { %4063 = vmatmul.mubr.msk.f32.vlgmr.msra.gmra.mrb[2].mxu1 %vm1122_vm2, %v1215_v51  ;;  %v1118_v51 = vld [vmem:[%s4524_s29 + $0x18] sm:$0xff] }
 0x4e7   : > { %4066 = vmatpush3.xpose.msk.msra.mxu1 %vm1122_vm2, %v1295_v48  ;;  %4067 = vmatprep.mubr.msk.f32.mxu1 %vm4472_vm1, %v4473_v14 }
 0x4e8   : > { %4070 = vmatprep.subr.mxu1 %v4473_v14 }
 0x4ea   : > { %4068 = vmatmul.mubr.msk.f32.vlgmr.msra.gmra.mrb[4].mxu1 %vm1122_vm2, %v1293_v52 }
 0x4eb   : > { %4072 = vmatprep.mubr.msk.f32.mxu1 %vm4472_vm1, %v4473_v14 }
 0x5b9   : > { %v1288_v53 = vpop.f32.mrb[2].mxu1 }
 0x5ba   : > { %v4064_v54 = vpop.f32.mrb[3].mxu1 }
 0x5bd   : > { %v1366_v55 = vpop.f32.mrb[4].mxu1 }
 0x5be   : > { %v1370_v56 = vmul.f32 0.35355338, %v1366_v55  ;;  %v4069_v57 = vpop.f32.mrb[5].mxu1 }
 0x5c0   : > { %v1371_v58 = vadd.f32 %v1370_v56, %v4706_v37 }
 0x5c2   : > { %v1372_v59 = vsel %vm1122_vm2, %v1371_v58, -inf }
 0x5c3   : > { %1373 = vmax.xlane.f32.xlu1 %v1372_v59 }
 0x5d4   : > { %1383 = vrot.lane.b32.xlu1 %v4689_v27, %s4479_s16 }
 0x5d8   : > { %1607 = vrot.lane.b32.xlu1 %v4689_v27, %s4480_s18 }
 0x5dc   : > { %1605 = vrot.lane.b32.xlu1 %v4689_v27, %s4481_s23 }
 0x650   : > { %v1374_v60 = vpop.xlane.xlu1 %1373 }
 0x651   : > { %v1375_v61 = vsub.f32 %v1371_v58, %v1374_v60  ;;  %v3908_v60 = vld [vmem:[%s4529_s3] ss:$0 sm:$0xff] }
 0x653   : > { %v1376_v62 = vmul.f32 1.442695, %v1375_v61 }
 0x654   : > { %v1384_v63 = vpop.permute.xlu1 %1383 }
 0x655   : > { %4389 = vpow2.f32 %v1376_v62  ;;  %4071 = vmatpush3.msra.mxu1 %v1384_v63 }
 0x656   : > { %4080 = vmatprep.subr.mxu1 %v4473_v14 }
 0x658   : > { %v1608_v8 = vpop.permute.xlu1 %1607 }
 0x65c   : > { %v1606_v12 = vpop.permute.xlu1 %1605 }
 0x65f   : > { %v4390_v0 = vpop.eup %4389 }
 0x660   : > { %v1378_v1 = vsel %vm1122_vm2, %v4390_v0, 0.0 }
 0x661   : > { %1379 = vadd.xlane.f32.xlu0 %v1378_v1 }
 0x677   : > { %1696 = vrot.lane.b32.xlu0 %v4689_v27, %s4482_s22 }
 0x67b   : > { %1848 = vrot.lane.b32.xlu0 %v4689_v27, %s4989_s26  ;;  %s5008_s26 = sld [smem:[#allocation4_spill]] }
 0x6ee   : > { %v1380_v3 = vpop.xlane.xlu0 %1379 }
 0x6ef   : > { %4391 = vrcp.f32 %v1380_v3 }
 0x6f2   : > { %v1697_v7 = vpop.permute.xlu0 %1696 }
 0x6f6   : > { %v1849_v31 = vpop.permute.xlu0 %1848 }
 0x6f9   : > { %v4392_v4 = vpop.eup %4391 }
 0x6fa   : > { %v1382_v5 = vmul.f32 %v4392_v4, %v4390_v0 }
 0x6fc   : > { %4073 = vmatmul.mubr.msk.f32.vlgmr.msra.gmra.mrb[6].mxu1 %vm1122_vm2, %v1382_v5 }
 0x6fd   : > { %4081 = vmatpush3.msra.mxu1 %v1115_v6  ;;  %4082 = vmatprep.mubr.msk.f32.mxu1 %vm4472_vm1, %v4473_v14 }
 0x6fe   : > { %4090 = vmatprep.subr.mxu1 %v4473_v14 }
 0x700   : > { %4083 = vmatmul.mubr.msk.f32.vlgmr.msra.gmra.mrb[8].mxu1 %vm1122_vm2, %v1288_v53 }
 0x701   : > { %4091 = vmatpush3.msra.mxu1 %v1697_v7  ;;  %4092 = vmatprep.mubr.msk.f32.mxu1 %vm4472_vm1, %v4473_v14  ;;  %v2125_v7 = vld [vmem:[%s4544_s19] sm:$0xff] }
 0x702   : > { %4100 = vmatprep.subr.mxu1 %v4473_v14 }
 0x7cf   : > { %v1455_v9 = vpop.f32.mrb[6].mxu1 }
 0x7d0   : > { %v4074_v10 = vpop.f32.mrb[7].mxu1  ;;  %4078 = vmatmul.mubr.msk.f32.vlgmr.msra.gmra.mrb[2].mxu0 %vm1122_vm2, %v1455_v9 }
 0x7d1   : > { %4086 = vmatpush3.xpose.msk.msra.mxu0 %vm1122_vm2, %v1608_v8  ;;  %4087 = vmatprep.mubr.msk.f32.mxu0 %vm4472_vm1, %v4473_v14  ;;  %v2126_v8 = vld [vmem:[%s4544_s19 + $0x8] sm:$0xff]  ;;  %v2127_v10 = vld [vmem:[%s4544_s19 + $0x10] sm:$0xff] }
 0x7d2   : > { %4095 = vmatprep.subr.mxu0 %v4473_v14  ;;  %v4275_v9 = vpack.c.bf16 %v2126_v8, %v2125_v7 }
 0x7d3   : > { %v1601_v13 = vpop.f32.mrb[8].mxu1 }
 0x7d4   : > { %v4084_v15 = vpop.f32.mrb[9].mxu1  ;;  %4088 = vmatmul.mubr.msk.f32.vlgmr.msra.gmra.mrb[4].mxu0 %vm1122_vm2, %v1606_v12  ;;  %v2128_v12 = vld [vmem:[%s4544_s19 + $0x18] sm:$0xff] }
 0x7d5   : > { %4097 = vmatprep.mubr.msk.f32.mxu0 %vm4472_vm1, %v4473_v14  ;;  %4096 = vmatpush3.msra.mxu0 %v1117_v36 }
 0x7d6   : > { %4105 = vmatprep.subr.mxu0 %v4473_v14 }
 0x8a3   : > { %v1528_v16 = vpop.f32.mrb[2].mxu0 }
 0x8a4   : > { %v1602_v17 = vadd.f32 %v1601_v13, %v1528_v16  ;;  %v4079_v18 = vpop.f32.mrb[3].mxu0 }
 0x8a5   : > { %v3909_v18 = vld [vmem:[%s4534_s8] ss:$0 sm:$0xff] }
 0x8a7   : > { %v1679_v19 = vpop.f32.mrb[4].mxu0 }
 0x8a8   : > { %v1683_v20 = vmul.f32 0.35355338, %v1679_v19  ;;  %v4089_v21 = vpop.f32.mrb[5].mxu0 }
 0x8aa   : > { %v1684_v22 = vadd.f32 %v1683_v20, %v4706_v37  ;;  %v3910_v20 = vld [vmem:[%s4539_s14] ss:$0 sm:$0xff] }
 0x8ac   : > { %v1685_v23 = vsel %vm1122_vm2, %v1684_v22, -inf }
 0x8ad   : > { %1686 = vmax.xlane.f32.xlu1 %v1685_v23  ;;  %v2218_v23 = vld [vmem:[%s4554_s30] sm:$0xff] }
 0x93a   : > { %v1687_v25 = vpop.xlane.xlu1 %1686 }
 0x93b   : > { %v1688_v26 = vsub.f32 %v1684_v22, %v1687_v25  ;;  %v2219_v25 = vld [vmem:[%s4554_s30 + $0x8] sm:$0xff] }
 0x93d   : > { %v1689_v28 = vmul.f32 1.442695, %v1688_v26  ;;  %v4281_v26 = vpack.c.bf16 %v2219_v25, %v2218_v23 }
 0x93f   : > { %4393 = vpow2.f32 %v1689_v28  ;;  %v2220_v28 = vld [vmem:[%s4554_s30 + $0x10] sm:$0xff] }
 0x949   : > { %v4394_v29 = vpop.eup %4393 }
 0x94a   : > { %v1691_v30 = vsel %vm1122_vm2, %v4394_v29, 0.0 }
 0x94b   : > { %1692 = vadd.xlane.f32.xlu0 %v1691_v30 }
 0x961   : > { %1846 = vrot.lane.b32.xlu0 %v4689_v27, %s4990_s0  ;;  %s5009_s0 = sld [smem:[#allocation6_spill]] }
 0x9d8   : > { %v1693_v32 = vpop.xlane.xlu0 %1692 }
 0x9d9   : > { %4395 = vrcp.f32 %v1693_v32  ;;  %v2223_v32 = vld [vmem:[%s4554_s30 + $0x28] sm:$0xff] }
 0x9dc   : > { %v1847_v35 = vpop.permute.xlu0 %1846 }
 0x9e3   : > { %v4396_v33 = vpop.eup %4395 }
 0x9e4   : > { %v1695_v34 = vmul.f32 %v4396_v33, %v4394_v29  ;;  %v2221_v29 = vld [vmem:[%s4554_s30 + $0x18] sm:$0xff] }
 0x9e5   : > { %v4284_v30 = vpack.c.bf16 %v2221_v29, %v2220_v28 }
 0x9e6   : > { %4093 = vmatmul.mubr.msk.f32.vlgmr.msra.gmra.mrb[10].mxu1 %vm1122_vm2, %v1695_v34  ;;  %v2224_v34 = vld [vmem:[%s4554_s30 + $0x30] sm:$0xff] }
 0x9e7   : > { %4101 = vmatpush3.xpose.msk.msra.mxu1 %vm1122_vm2, %v1849_v31  ;;  %4102 = vmatprep.mubr.msk.f32.mxu1 %vm4472_vm1, %v4473_v14  ;;  %v2222_v31 = vld [vmem:[%s4554_s30 + $0x20] sm:$0xff] }
 0x9e8   : > { %4110 = vmatprep.subr.mxu1 %v4473_v14  ;;  %v4287_v33 = vpack.c.bf16 %v2223_v32, %v2222_v31 }
 0x9ea   : > { %4103 = vmatmul.mubr.msk.f32.vlgmr.msra.gmra.mrb[12].mxu1 %vm1122_vm2, %v1847_v35  ;;  %v2225_v35 = vld [vmem:[%s4554_s30 + $0x38] sm:$0xff] }
 0x9eb   : > { %4112 = vmatprep.mubr.msk.f32.mxu1 %vm4472_vm1, %v4473_v14  ;;  %4111 = vmatpush3.msra.mxu1 %v1118_v51  ;;  %v4290_v36 = vpack.c.bf16 %v2225_v35, %v2224_v34  ;;  %v3913_v51 = vld [vmem:[%s4559_s6] ss:$0 sm:$0xff] }
 0x9ec   : > { %4280 = vmatprep.subr.bf16.mxu1 %v4471_v11 }
 0xab9   : > { %v1768_v38 = vpop.f32.mrb[10].mxu1 }
 0xaba   : > { %v4094_v39 = vpop.f32.mrb[11].mxu1  ;;  %4098 = vmatmul.mubr.msk.f32.vlgmr.msra.gmra.mrb[6].mxu0 %vm1122_vm2, %v1768_v38  ;;  %v3911_v38 = vld [vmem:[%s4549_s24] ss:$0 sm:$0xff] }
 0xabb   : > { %4107 = vmatprep.mubr.msk.f32.mxu0 %vm4472_vm1, %v4473_v14 }
 0xabd   : > { %v1920_v40 = vpop.f32.mrb[12].mxu1 }
 0xabe   : > { %v1924_v41 = vmul.f32 0.35355338, %v1920_v40  ;;  %v4104_v42 = vpop.f32.mrb[13].mxu1 }
 0xac0   : > { %v1925_v43 = vadd.f32 %v1924_v41, %v4706_v37 }
 0xac2   : > { %v1926_v44 = vsel %vm1122_vm2, %v1925_v43, -inf }
 0xac3   : > { %1927 = vmax.xlane.f32.xlu1 %v1926_v44 }
 0xad4   : > { %1937 = vrot.lane.b32.xlu1 %v4689_v27, %s4988_s20  ;;  %s5007_s20 = sld [smem:[#allocation3_spill]] }
 0xada   : > { %v3915_v7 = vld [vmem:[%s5007_s20] ss:$0 sm:$0xff]  ;;  %s5020_s20 = sld [smem:[#allocation14_spill]] }
 0xb50   : > { %v1928_v45 = vpop.xlane.xlu1 %1927 }
 0xb51   : > { %v1929_v46 = vsub.f32 %v1925_v43, %v1928_v45 }
 0xb53   : > { %v1930_v47 = vmul.f32 1.442695, %v1929_v46 }
 0xb54   : > { %v1938_v48 = vpop.permute.xlu1 %1937 }
 0xb55   : > { %4397 = vpow2.f32 %v1930_v47  ;;  %4106 = vmatpush3.msra.mxu0 %v1938_v48 }
 0xb56   : > { %4274 = vmatprep.subr.bf16.mxu0 %v4471_v11 }
 0xb5f   : > { %v4398_v49 = vpop.eup %4397 }
 0xb60   : > { %v1932_v50 = vsel %vm1122_vm2, %v4398_v49, 0.0 }
 0xb61   : > { %1933 = vadd.xlane.f32.xlu0 %v1932_v50 }
 0xb8d   : > { %v1841_v52 = vpop.f32.mrb[6].mxu0 }
 0xb8e   : > { %v1845_v53 = vadd.f32 %v1841_v52, %v1602_v17  ;;  %v4099_v27 = vpop.f32.mrb[7].mxu0 }
 0xbee   : > { %v1934_v54 = vpop.xlane.xlu0 %1933 }
 0xbef   : > { %4399 = vrcp.f32 %v1934_v54 }
 0xbf9   : > { %v4400_v55 = vpop.eup %4399 }
 0xbfa   : > { %v1936_v56 = vmul.f32 %v4400_v55, %v4398_v49 }
 0xbfc   : > { %4108 = vmatmul.mubr.msk.f32.vlgmr.msra.gmra.mrb[8].mxu0 %vm1122_vm2, %v1936_v56 }
 0xbfd   : > { %4123 = vmatprep.mubr.msk.f32.mxu0 %vm4472_vm1, %v4473_v14  ;;  %4276 = vmatpush3.bf16.msra.mxu0 %v4275_v9  ;;  %v3916_v9 = vld [vmem:[%s5008_s26] ss:$0 sm:$0xff]  ;;  %s5018_s26 = sld [smem:[#allocation13_spill]] }
 0xbfe   : > { %4277 = vmatprep.subr.bf16.mxu0 %v4471_v11 }
 0xccf   : > { %v2009_v57 = vpop.f32.mrb[8].mxu0 }
 0xcd0   : > { %v4109_v58 = vpop.f32.mrb[9].mxu0  ;;  %4113 = vmatmul.mubr.msk.f32.vlgmr.msra.gmra.mrb[14].mxu1 %vm1122_vm2, %v2009_v57 }
 0xcd1   : > { %4142 = vmatprep.mubr.msk.f32.mxu1 %vm4472_vm1, %v4473_v14  ;;  %4282 = vmatpush3.bf16.msra.mxu1 %v4281_v26 }
 0xcd2   : > { %4283 = vmatprep.subr.bf16.mxu1 %v4471_v11 }
 0xcd5   : > { %4285 = vmatpush3.bf16.msra.mxu1 %v4284_v30 }
 0xcd6   : > { %4286 = vmatprep.subr.bf16.mxu1 %v4471_v11 }
 0xcd9   : > { %4288 = vmatpush3.bf16.msra.mxu1 %v4287_v33 }
 0xcda   : > { %4289 = vmatprep.subr.bf16.mxu1 %v4471_v11 }
 0xcdd   : > { %4291 = vmatpush3.bf16.msra.mxu1 %v4290_v36 }
 0xcde   : > { %4161 = vmatprep.subr.mxu1 %v4473_v14 }
 0xda3   : > { %v2082_v59 = vpop.f32.mrb[14].mxu1 }
 0xda4   : > { %v2086_v61 = vadd.f32 %v2082_v59, %v1845_v53  ;;  %v4114_v62 = vpop.f32.mrb[15].mxu1 }
 0xda5   : > { %v2338_v62 = vld [vmem:[%s5006_s11 + $0x8] sm:$0xff] }
 0xda6   : > { %v2094_v63 = vadd.f32 %v3908_v60, %v2086_v61  ;;  %v2337_v61 = vld [vmem:[%s5006_s11] sm:$0xff] }
 0xda8   : > { %v2095_v0 = vadd.f32 %v2094_v63, %v4682_v24  ;;  %v4278_v24 = vpack.c.bf16 %v2128_v12, %v2127_v10  ;;  %v4293_v63 = vpack.c.bf16 %v2338_v62, %v2337_v61 }
 0xdaa   : > { %v2098_v1 = vsel %vm1002_vm0, %v2095_v0, 0.0  ;;  %4279 = vmatpush3.bf16.msra.mxu0 %v4278_v24  ;;  %v3917_v24 = vld [vmem:[%s5009_s0] ss:$0 sm:$0xff]  ;;  %s5019_s0 = sld [smem:[#allocation12_spill]] }
 0xdab   : > { %2099 = vadd.xlane.f32.xlu1 %v2098_v1  ;;  %4292 = vmatprep.subr.bf16.mxu0 %v4471_v11  ;;  %v2340_v1 = vld [vmem:[%s5006_s11 + $0x18] sm:$0xff] }
 0xe38   : > { %v2100_v2 = vpop.xlane.xlu1 %2099 }
 0xe39   : > { %v2101_v3 = vmul.f32 0.03125, %v2100_v2 }
 0xe3b   : > { %v2102_v4 = vsub.f32 %v2095_v0, %v2101_v3  ;;  %v2339_v0 = vld [vmem:[%s5006_s11 + $0x10] sm:$0xff] }
 0xe3c   : > { %v4296_v2 = vpack.c.bf16 %v2340_v1, %v2339_v0 }
 0xe3d   : > { %v2103_v5 = vmul.f32 %v2102_v4, %v2102_v4 }
 0xe3f   : > { %v2104_v6 = vsel %vm1002_vm0, %v2103_v5, 0.0 }
 0xe40   : > { %2105 = vadd.xlane.f32.xlu0 %v2104_v6 }
 0xecd   : > { %v2106_v13 = vpop.xlane.xlu0 %2105 }
 0xece   : > { %v2107_v15 = vmul.f32 0.03125, %v2106_v13 }
 0xed0   : > { %v2108_v16 = vadd.f32 1e-12, %v2107_v15 }
 0xed2   : > { %4401 = vrsqrt.f32 %v2108_v16 }
 0xedc   : > { %v4402_v17 = vpop.eup %4401 }
 0xedd   : > { %v2110_v19 = vmul.f32 %v4402_v17, %v2102_v4 }
 0xedf   : > { %v2117_v21 = vmul.f32 %v3909_v18, %v2110_v19 }
 0xee1   : > { %v2124_v22 = vadd.f32 %v3910_v20, %v2117_v21 }
 0xee3   : > { %4124 = vmatmul.mubr.msk.f32.vlgmr.msra.gmra.mrb[10].mxu0 %vm1002_vm0, %v2124_v22 }
 0xee4   : > { %4153 = vmatprep.mubr.msk.f32.mxu0 %vm4472_vm1, %v4473_v14  ;;  %4294 = vmatpush3.bf16.msra.mxu0 %v4293_v63 }
 0xee5   : > { %4295 = vmatprep.subr.bf16.mxu0 %v4471_v11 }
 0xee8   : > { %4297 = vmatpush3.bf16.msra.mxu0 %v4296_v2 }
 0xee9   : > { %4156 = vmatprep.subr.mxu0 %v4473_v14 }
 0xfb6   : > { %v2205_v39 = vpop.f32.mrb[10].mxu0 }
 0xfb7   : > { %v2206_v40 = vadd.f32 %v3911_v38, %v2205_v39  ;;  %v4125_v41 = vpop.f32.mrb[11].mxu0 }
 0xfb9   : > { %v2209_v42 = vmul.f32 %v2206_v40, %v2206_v40 }
 0xfbb   : > { %v2210_v43 = vmul.f32 %v2209_v42, %v2206_v40 }
 0xfbd   : > { %v2211_v44 = vmul.f32 0.044715, %v2210_v43 }
 0xfbf   : > { %v2212_v45 = vadd.f32 %v2211_v44, %v2206_v40 }
 0xfc1   : > { %v2213_v46 = vmul.f32 0.7978846, %v2212_v45 }
 0xfc3   : > { %4403 = vtanh.f32 %v2213_v46 }
 0xfcd   : > { %v4404_v47 = vpop.eup %4403 }
 0xfce   : > { %v2215_v48 = vadd.f32 1.0, %v4404_v47 }
 0xfd0   : > { %v2216_v49 = vmul.f32 0.5, %v2215_v48 }
 0xfd2   : > { %v2217_v50 = vmul.f32 %v2216_v49, %v2206_v40 }
 0xfd4   : > { %4143 = vmatmul.mubr.msk.f32.vlgmr.msra.gmra.mrb[16].mxu1 %vm2233_vm4, %v2217_v50 }
 0xfd5   : > { %4163 = vmatprep.mubr.msk.f32.mxu1 %vm4472_vm1, %v4473_v14 }
0x10a7   : > { %v2303_v52 = vpop.f32.mrb[16].mxu1 }
0x10a8   : > { %v2304_v53 = vadd.f32 %v3913_v51, %v2303_v52  ;;  %v4144_v27 = vpop.f32.mrb[17].mxu1 }
0x10aa   : > { %v2307_v54 = vadd.f32 %v2304_v53, %v2124_v22 }
0x10ac   : > { %v2310_v55 = vsel %vm1002_vm0, %v2307_v54, 0.0 }
0x10ad   : > { %2311 = vadd.xlane.f32.xlu0 %v2310_v55 }
0x113a   : > { %v2312_v56 = vpop.xlane.xlu0 %2311 }
0x113b   : > { %v2313_v57 = vmul.f32 0.03125, %v2312_v56 }
0x113d   : > { %v2314_v58 = vsub.f32 %v2307_v54, %v2313_v57 }
0x113f   : > { %v2315_v59 = vmul.f32 %v2314_v58, %v2314_v58 }
0x1141   : > { %v2316_v60 = vsel %vm1002_vm0, %v2315_v59, 0.0 }
0x1142   : > { %2317 = vadd.xlane.f32.xlu0 %v2316_v60 }
0x11cf   : > { %v2318_v3 = vpop.xlane.xlu0 %2317 }
0x11d0   : > { %v2319_v4 = vmul.f32 0.03125, %v2318_v3 }
0x11d2   : > { %v2320_v5 = vadd.f32 1e-12, %v2319_v4 }
0x11d4   : > { %4405 = vrsqrt.f32 %v2320_v5 }
0x11de   : > { %v4406_v6 = vpop.eup %4405 }
0x11df   : > { %v2322_v8 = vmul.f32 %v4406_v6, %v2314_v58 }
0x11e1   : > { %v2329_v10 = vmul.f32 %v3915_v7, %v2322_v8 }
0x11e3   : > { %v4828_v12 = vadd.f32 %v3916_v9, %v2329_v10 }
0x11e5   : > { %4154 = vmatmul.mubr.msk.f32.vlgmr.msra.gmra.mrb[12].mxu0 %vm1002_vm0, %v4828_v12 }
0x11e6   : > { %4158 = vmatprep.mubr.msk.f32.mxu0 %vm4472_vm1, %v4473_v14 }
0x12b8   : > { %v2417_v13 = vpop.f32.mrb[12].mxu0 }
0x12b9   : > { %v4835_v15 = vadd.f32 %v3917_v24, %v2417_v13  ;;  %v4155_v16 = vpop.f32.mrb[13].mxu0 }
0x12bb   : > { %2593 = vrot.lane.b32.xlu1 %v4835_v15, %s4476_s10  ;;  %2426 = vrot.lane.b32.xlu0 %v4835_v15, %s4475_s7  ;;  %s5010_s7 = sld [smem:[#allocation7_spill]]  ;;  %s5012_s10 = smov 72  }
0x12bf   : > { %2591 = vrot.lane.b32.xlu0 %v4835_v15, %s4478_s15  ;;  %s5013_s15 = smov 40  }
0x12c1   : > { %v2422_v43 = vld [vmem:[%s5010_s7 + $0x8] sm:$0xff]  ;;  %v2421_v52 = vld [vmem:[%s5010_s7] sm:$0xff] }
0x132d   : > { %v2427_v17 = vpop.permute.xlu0 %2426  ;;  %v2594_v18 = vpop.permute.xlu1 %2593 }
0x132e   : > { %4157 = vmatpush3.xpose.msk.msra.mxu0 %vm1122_vm2, %v2427_v17 }
0x132f   : > { %4166 = vmatprep.subr.mxu0 %v4473_v14 }
0x1331   : > { %4159 = vmatmul.mubr.msk.f32.vlgmr.msra.gmra.mrb[14].mxu0 %vm1122_vm2, %v4835_v15  ;;  %v2592_v19 = vpop.permute.xlu0 %2591 }
0x1332   : > { %4167 = vmatpush3.xpose.msk.msra.mxu0 %vm1122_vm2, %v2594_v18  ;;  %4168 = vmatprep.mubr.msk.f32.mxu0 %vm4472_vm1, %v4473_v14  ;;  %v2423_v18 = vld [vmem:[%s5010_s7 + $0x10] sm:$0xff] }
0x1333   : > { %4176 = vmatprep.subr.mxu0 %v4473_v14 }
0x1335   : > { %4169 = vmatmul.mubr.msk.f32.vlgmr.msra.gmra.mrb[16].mxu0 %vm1122_vm2, %v2592_v19 }
0x1336   : > { %4178 = vmatprep.mubr.msk.f32.mxu0 %vm4472_vm1, %v4473_v14  ;;  %4177 = vmatpush3.msra.mxu0 %v2422_v43 }
0x1337   : > { %4186 = vmatprep.subr.mxu0 %v4473_v14 }
0x1404   : > { %v2498_v20 = vpop.f32.mrb[14].mxu0 }
0x1405   : > { %v2502_v21 = vmul.f32 0.35355338, %v2498_v20  ;;  %v4160_v22 = vpop.f32.mrb[15].mxu0 }
0x1407   : > { %v2503_v23 = vadd.f32 %v2502_v21, %v4706_v37 }
0x1408   : > { %v2665_v25 = vpop.f32.mrb[16].mxu0 }
0x1409   : > { %v2669_v26 = vmul.f32 0.35355338, %v2665_v25  ;;  %v4170_v28 = vpop.f32.mrb[17].mxu0  ;;  %v2504_v29 = vsel %vm1122_vm2, %v2503_v23, -inf }
0x140a   : > { %2505 = vmax.xlane.f32.xlu0 %v2504_v29 }
0x140b   : > { %v2670_v30 = vadd.f32 %v2669_v26, %v4706_v37 }
0x140d   : > { %v2671_v31 = vsel %vm1122_vm2, %v2670_v30, -inf }
0x140e   : > { %2672 = vmax.xlane.f32.xlu1 %v2671_v31 }
0x141f   : > { %2682 = vrot.lane.b32.xlu1 %v4835_v15, %s4479_s16  ;;  %s5014_s16 = sld [smem:[#allocation8_spill]] }
0x1423   : > { %2906 = vrot.lane.b32.xlu1 %v4835_v15, %s4480_s18  ;;  %s5015_s18 = sld [smem:[#allocation11_spill]] }
0x1425   : > { %v3935_v43 = vld [vmem:[%s5014_s16] ss:$0 sm:$0xff]  ;;  %s995_s16 = scalar_lea.vmem %s4652_s27, %s5025_s1 }
0x1427   : > { %2904 = vrot.lane.b32.xlu1 %v4835_v15, %s4481_s23  ;;  %s5016_s23 = sld [smem:[#allocation9_spill]] }
0x1497   : > { %v2506_v32 = vpop.xlane.xlu0 %2505 }
0x1498   : > { %v2507_v33 = vsub.f32 %v2503_v23, %v2506_v32 }
0x149a   : > { %v2508_v34 = vmul.f32 1.442695, %v2507_v33  ;;  %v2424_v33 = vld [vmem:[%s5010_s7 + $0x18] sm:$0xff] }
0x149b   : > { %v2673_v35 = vpop.xlane.xlu1 %2672 }
0x149c   : > { %4407 = vpow2.f32 %v2508_v34  ;;  %v2674_v36 = vsub.f32 %v2670_v30, %v2673_v35 }
0x149e   : > { %v2675_v38 = vmul.f32 1.442695, %v2674_v36 }
0x149f   : > { %v2683_v49 = vpop.permute.xlu1 %2682 }
0x14a0   : > { %4409 = vpow2.f32 %v2675_v38 }
0x14a3   : > { %v2907_v54 = vpop.permute.xlu1 %2906 }
0x14a6   : > { %v4408_v39 = vpop.eup %4407 }
0x14a7   : > { %v2510_v40 = vsel %vm1122_vm2, %v4408_v39, 0.0  ;;  %v2905_v57 = vpop.permute.xlu1 %2904 }
0x14a8   : > { %2511 = vadd.xlane.f32.xlu0 %v2510_v40 }
0x14aa   : > { %v4410_v41 = vpop.eup %4409 }
0x14ab   : > { %v2677_v42 = vsel %vm1122_vm2, %v4410_v41, 0.0 }
0x14ac   : > { %2678 = vadd.xlane.f32.xlu0 %v2677_v42 }
0x14c2   : > { %2515 = vrot.lane.b32.xlu0 %v4835_v15, %s4474_s2  ;;  %s5011_s2 = smov 104  }
0x1535   : > { %v2512_v44 = vpop.xlane.xlu0 %2511 }
0x1536   : > { %4411 = vrcp.f32 %v2512_v44 }
0x1539   : > { %v2679_v45 = vpop.xlane.xlu0 %2678 }
0x153a   : > { %4413 = vrcp.f32 %v2679_v45 }
0x153d   : > { %v2516_v46 = vpop.permute.xlu0 %2515 }
0x153e   : > { %4162 = vmatpush3.msra.mxu1 %v2516_v46 }
0x153f   : > { %4171 = vmatprep.subr.mxu1 %v4473_v14 }
0x1540   : > { %v4412_v47 = vpop.eup %4411 }
0x1541   : > { %v2514_v48 = vmul.f32 %v4412_v47, %v4408_v39 }
0x1543   : > { %4164 = vmatmul.mubr.msk.f32.vlgmr.msra.gmra.mrb[18].mxu1 %vm1122_vm2, %v2514_v48 }
0x1544   : > { %v4414_v50 = vpop.eup %4413  ;;  %4172 = vmatpush3.msra.mxu1 %v2683_v49  ;;  %4173 = vmatprep.mubr.msk.f32.mxu1 %vm4472_vm1, %v4473_v14 }
0x1545   : > { %v2681_v51 = vmul.f32 %v4414_v50, %v4410_v41  ;;  %4181 = vmatprep.subr.mxu1 %v4473_v14 }
0x1547   : > { %4174 = vmatmul.mubr.msk.f32.vlgmr.msra.gmra.mrb[20].mxu1 %vm1122_vm2, %v2681_v51 }
0x1548   : > { %4183 = vmatprep.mubr.msk.f32.mxu1 %vm4472_vm1, %v4473_v14  ;;  %4182 = vmatpush3.msra.mxu1 %v2421_v52 }
0x1549   : > { %4191 = vmatprep.subr.mxu1 %v4473_v14 }
0x1616   : > { %v2587_v53 = vpop.f32.mrb[18].mxu1 }
0x1617   : > { %v4165_v27 = vpop.f32.mrb[19].mxu1  ;;  %4184 = vmatmul.mubr.msk.f32.vlgmr.msra.gmra.mrb[22].mxu1 %vm1122_vm2, %v2587_v53 }
0x1618   : > { %4193 = vmatprep.mubr.msk.f32.mxu1 %vm4472_vm1, %v4473_v14  ;;  %v3424_v27 = vld [vmem:[%s5015_s18] sm:$0xff] }
0x161a   : > { %v2754_v55 = vpop.f32.mrb[20].mxu1 }
0x161b   : > { %v4175_v56 = vpop.f32.mrb[21].mxu1  ;;  %4179 = vmatmul.mubr.msk.f32.vlgmr.msra.gmra.mrb[18].mxu0 %vm1122_vm2, %v2754_v55 }
0x161c   : > { %4187 = vmatpush3.xpose.msk.msra.mxu0 %vm1122_vm2, %v2907_v54  ;;  %4188 = vmatprep.mubr.msk.f32.mxu0 %vm4472_vm1, %v4473_v14  ;;  %v3425_v54 = vld [vmem:[%s5015_s18 + $0x8] sm:$0xff]  ;;  %v3426_v56 = vld [vmem:[%s5015_s18 + $0x10] sm:$0xff] }
0x161d   : > { %4196 = vmatprep.subr.mxu0 %v4473_v14  ;;  %v4299_v55 = vpack.c.bf16 %v3425_v54, %v3424_v27 }
0x161f   : > { %4189 = vmatmul.mubr.msk.f32.vlgmr.msra.gmra.mrb[20].mxu0 %vm1122_vm2, %v2905_v57  ;;  %v3427_v57 = vld [vmem:[%s5015_s18 + $0x18] sm:$0xff] }
0x1620   : > { %4198 = vmatprep.mubr.msk.f32.mxu0 %vm4472_vm1, %v4473_v14  ;;  %4197 = vmatpush3.msra.mxu0 %v2423_v18  ;;  %v3938_v18 = vld [vmem:[%s5019_s0] ss:$0 sm:$0xff] }
0x1621   : > { %4206 = vmatprep.subr.mxu0 %v4473_v14 }
0x16ea   : > { %v2900_v58 = vpop.f32.mrb[22].mxu1 }
0x16eb   : > { %v4185_v59 = vpop.f32.mrb[23].mxu1 }
0x16ee   : > { %v2827_v60 = vpop.f32.mrb[18].mxu0 }
0x16ef   : > { %v2901_v61 = vadd.f32 %v2900_v58, %v2827_v60  ;;  %v4180_v62 = vpop.f32.mrb[19].mxu0 }
0x16f0   : > { %v3936_v62 = vld [vmem:[%s5016_s23] ss:$0 sm:$0xff] }
0x16f2   : > { %v2978_v63 = vpop.f32.mrb[20].mxu0 }
0x16f3   : > { %v2982_v0 = vmul.f32 0.35355338, %v2978_v63  ;;  %v4190_v1 = vpop.f32.mrb[21].mxu0 }
0x16f5   : > { %v2983_v2 = vadd.f32 %v2982_v0, %v4706_v37 }
0x16f7   : > { %v2984_v3 = vsel %vm1122_vm2, %v2983_v2, -inf }
0x16f8   : > { %2985 = vmax.xlane.f32.xlu0 %v2984_v3  ;;  %v3517_v3 = vld [vmem:[%s5018_s26] sm:$0xff] }
0x170e   : > { %2995 = vrot.lane.b32.xlu0 %v4835_v15, %s4482_s22  ;;  %s5017_s22 = sld [smem:[#allocation10_spill]] }
0x1712   : > { %3145 = vrot.lane.b32.xlu0 %v4835_v15, %s5011_s2  ;;  %s5021_s2 = sld [smem:[#allocation17_spill]] }
0x1714   : > { %v3937_v0 = vld [vmem:[%s5017_s22] ss:$0 sm:$0xff] }
0x1785   : > { %v2986_v4 = vpop.xlane.xlu0 %2985 }
0x1786   : > { %v2987_v5 = vsub.f32 %v2983_v2, %v2986_v4  ;;  %v3518_v4 = vld [vmem:[%s5018_s26 + $0x8] sm:$0xff] }
0x1788   : > { %v2988_v6 = vmul.f32 1.442695, %v2987_v5  ;;  %v4305_v5 = vpack.c.bf16 %v3518_v4, %v3517_v3 }
0x1789   : > { %v2996_v7 = vpop.permute.xlu0 %2995 }
0x178a   : > { %4415 = vpow2.f32 %v2988_v6  ;;  %4192 = vmatpush3.msra.mxu1 %v2996_v7  ;;  %v3519_v6 = vld [vmem:[%s5018_s26 + $0x10] sm:$0xff]  ;;  %v3520_v7 = vld [vmem:[%s5018_s26 + $0x18] sm:$0xff] }
0x178b   : > { %4201 = vmatprep.subr.mxu1 %v4473_v14 }
0x178d   : > { %v3146_v17 = vpop.permute.xlu0 %3145 }
0x1794   : > { %v4416_v8 = vpop.eup %4415 }
0x1795   : > { %v2990_v9 = vsel %vm1122_vm2, %v4416_v8, 0.0 }
0x1796   : > { %2991 = vadd.xlane.f32.xlu1 %v2990_v9  ;;  %v3521_v9 = vld [vmem:[%s5018_s26 + $0x20] sm:$0xff] }
0x17a7   : > { %3147 = vrot.lane.b32.xlu1 %v4835_v15, %s5012_s10  ;;  %s5022_s10 = sld [smem:[#allocation15_spill]] }
0x1823   : > { %v2992_v10 = vpop.xlane.xlu1 %2991 }
0x1824   : > { %4417 = vrcp.f32 %v2992_v10  ;;  %v3522_v10 = vld [vmem:[%s5018_s26 + $0x28] sm:$0xff] }
0x1827   : > { %v3148_v16 = vpop.permute.xlu1 %3147 }
0x182e   : > { %v4418_v24 = vpop.eup %4417 }
0x182f   : > { %v2994_v13 = vmul.f32 %v4418_v24, %v4416_v8  ;;  %v4308_v8 = vpack.c.bf16 %v3520_v7, %v3519_v6  ;;  %v4311_v24 = vpack.c.bf16 %v3522_v10, %v3521_v9 }
0x1831   : > { %4194 = vmatmul.mubr.msk.f32.vlgmr.msra.gmra.mrb[24].mxu1 %vm1122_vm2, %v2994_v13  ;;  %v3523_v13 = vld [vmem:[%s5018_s26 + $0x30] sm:$0xff] }
0x1832   : > { %4202 = vmatpush3.xpose.msk.msra.mxu1 %vm1122_vm2, %v3148_v16  ;;  %4203 = vmatprep.mubr.msk.f32.mxu1 %vm4472_vm1, %v4473_v14  ;;  %v3524_v16 = vld [vmem:[%s5018_s26 + $0x38] sm:$0xff] }
0x1833   : > { %4211 = vmatprep.subr.mxu1 %v4473_v14 }
0x1835   : > { %4204 = vmatmul.mubr.msk.f32.vlgmr.msra.gmra.mrb[26].mxu1 %vm1122_vm2, %v3146_v17  ;;  %v4314_v17 = vpack.c.bf16 %v3524_v16, %v3523_v13 }
0x1836   : > { %4213 = vmatprep.mubr.msk.f32.mxu1 %vm4472_vm1, %v4473_v14  ;;  %4212 = vmatpush3.msra.mxu1 %v2424_v33  ;;  %v3940_v33 = vld [vmem:[%s5020_s20] ss:$0 sm:$0xff] }
0x1837   : > { %4304 = vmatprep.subr.bf16.mxu1 %v4471_v11 }
0x1904   : > { %v3067_v19 = vpop.f32.mrb[24].mxu1 }
0x1905   : > { %v4195_v20 = vpop.f32.mrb[25].mxu1  ;;  %4199 = vmatmul.mubr.msk.f32.vlgmr.msra.gmra.mrb[22].mxu0 %vm1122_vm2, %v3067_v19 }
0x1906   : > { %4208 = vmatprep.mubr.msk.f32.mxu0 %vm4472_vm1, %v4473_v14 }
0x1908   : > { %v3219_v21 = vpop.f32.mrb[26].mxu1 }
0x1909   : > { %v3223_v22 = vmul.f32 0.35355338, %v3219_v21  ;;  %v4205_v23 = vpop.f32.mrb[27].mxu1 }
0x190b   : > { %v3224_v25 = vadd.f32 %v3223_v22, %v4706_v37 }
0x190d   : > { %v3225_v26 = vsel %vm1122_vm2, %v3224_v25, -inf }
0x190e   : > { %3226 = vmax.xlane.f32.xlu1 %v3225_v26 }
0x199b   : > { %v3227_v28 = vpop.xlane.xlu1 %3226 }
0x199c   : > { %v3228_v29 = vsub.f32 %v3224_v25, %v3227_v28 }
0x199e   : > { %v3229_v30 = vmul.f32 1.442695, %v3228_v29 }
0x19a0   : > { %4419 = vpow2.f32 %v3229_v30 }
0x19aa   : > { %v4420_v31 = vpop.eup %4419 }
0x19ab   : > { %v3231_v32 = vsel %vm1122_vm2, %v4420_v31, 0.0 }
0x19ac   : > { %3232 = vadd.xlane.f32.xlu0 %v3231_v32 }
0x19c2   : > { %3236 = vrot.lane.b32.xlu0 %v4835_v15, %s5013_s15  ;;  %s5023_s15 = sld [smem:[#allocation16_spill]] }
0x19c8   : > { %v3943_v54 = vld [vmem:[%s5023_s15] ss:$0 sm:$0xff] }
0x19d8   : > { %v3140_v34 = vpop.f32.mrb[22].mxu0 }
0x19d9   : > { %v3144_v37 = vadd.f32 %v3140_v34, %v2901_v61  ;;  %v4200_v35 = vpop.f32.mrb[23].mxu0 }
0x1a39   : > { %v3233_v36 = vpop.xlane.xlu0 %3232 }
0x1a3a   : > { %4421 = vrcp.f32 %v3233_v36 }
0x1a3d   : > { %v3237_v38 = vpop.permute.xlu0 %3236 }
0x1a3e   : > { %4207 = vmatpush3.msra.mxu0 %v3237_v38 }
0x1a3f   : > { %4298 = vmatprep.subr.bf16.mxu0 %v4471_v11 }
0x1a44   : > { %v4422_v39 = vpop.eup %4421 }
0x1a45   : > { %v3235_v40 = vmul.f32 %v4422_v39, %v4420_v31 }
0x1a47   : > { %4209 = vmatmul.mubr.msk.f32.vlgmr.msra.gmra.mrb[24].mxu0 %vm1122_vm2, %v3235_v40 }
0x1a48   : > { %4224 = vmatprep.mubr.msk.f32.mxu0 %vm4472_vm1, %v4473_v14  ;;  %4300 = vmatpush3.bf16.msra.mxu0 %v4299_v55 }
0x1a49   : > { %4301 = vmatprep.subr.bf16.mxu0 %v4471_v11 }
0x1b1a   : > { %v3308_v15 = vpop.f32.mrb[24].mxu0 }
0x1b1b   : > { %v4210_v41 = vpop.f32.mrb[25].mxu0  ;;  %4214 = vmatmul.mubr.msk.f32.vlgmr.msra.gmra.mrb[28].mxu1 %vm1122_vm2, %v3308_v15 }
0x1b1c   : > { %4243 = vmatprep.mubr.msk.f32.mxu1 %vm4472_vm1, %v4473_v14  ;;  %4306 = vmatpush3.bf16.msra.mxu1 %v4305_v5 }
0x1b1d   : > { %4307 = vmatprep.subr.bf16.mxu1 %v4471_v11 }
0x1b20   : > { %4309 = vmatpush3.bf16.msra.mxu1 %v4308_v8 }
0x1b21   : > { %4310 = vmatprep.subr.bf16.mxu1 %v4471_v11 }
0x1b24   : > { %4312 = vmatpush3.bf16.msra.mxu1 %v4311_v24 }
0x1b25   : > { %4313 = vmatprep.subr.bf16.mxu1 %v4471_v11 }
0x1b28   : > { %4315 = vmatpush3.bf16.msra.mxu1 %v4314_v17 }
0x1bee   : > { %v3381_v42 = vpop.f32.mrb[28].mxu1 }
0x1bef   : > { %v3385_v44 = vadd.f32 %v3381_v42, %v3144_v37  ;;  %v4215_v45 = vpop.f32.mrb[29].mxu1 }
0x1bf1   : > { %v3393_v46 = vadd.f32 %v3935_v43, %v3385_v44  ;;  %v3635_v43 = vld [vmem:[%s5021_s2] sm:$0xff]  ;;  %v3636_v44 = vld [vmem:[%s5021_s2 + $0x8] sm:$0xff] }
0x1bf2   : > { %v4317_v45 = vpack.c.bf16 %v3636_v44, %v3635_v43 }
0x1bf3   : > { %v3394_v47 = vadd.f32 %v3393_v46, %v4828_v12  ;;  %v4302_v12 = vpack.c.bf16 %v3427_v57, %v3426_v56  ;;  %v3637_v46 = vld [vmem:[%s5021_s2 + $0x10] sm:$0xff]  ;;  %v3714_v57 = vld [vmem:[%s4644_s12] sm:$0xff] }
0x1bf5   : > { %v3397_v48 = vsel %vm1002_vm0, %v3394_v47, 0.0  ;;  %4303 = vmatpush3.bf16.msra.mxu0 %v4302_v12  ;;  %v3715_v12 = vld [vmem:[%s4644_s12 + $0x8] sm:$0xff] }
0x1bf6   : > { %3398 = vadd.xlane.f32.xlu1 %v3397_v48  ;;  %4316 = vmatprep.subr.bf16.mxu0 %v4471_v11 }
0x1c83   : > { %v3399_v49 = vpop.xlane.xlu1 %3398 }
0x1c84   : > { %v3400_v50 = vmul.f32 0.03125, %v3399_v49 }
0x1c86   : > { %v3401_v51 = vsub.f32 %v3394_v47, %v3400_v50  ;;  %v3638_v47 = vld [vmem:[%s5021_s2 + $0x18] sm:$0xff] }
0x1c87   : > { %v4320_v48 = vpack.c.bf16 %v3638_v47, %v3637_v46 }
0x1c88   : > { %v3402_v52 = vmul.f32 %v3401_v51, %v3401_v51 }
0x1c8a   : > { %v3403_v53 = vsel %vm1002_vm0, %v3402_v52, 0.0 }
0x1c8b   : > { %3404 = vadd.xlane.f32.xlu1 %v3403_v53  ;;  %v3942_v53 = vld [vmem:[%s5022_s10] ss:$0 sm:$0xff] }
0x1d18   : > { %v3405_v58 = vpop.xlane.xlu1 %3404 }
0x1d19   : > { %v3406_v59 = vmul.f32 0.03125, %v3405_v58  ;;  %v3716_v58 = vld [vmem:[%s4644_s12 + $0x10] sm:$0xff] }
0x1d1b   : > { %v3407_v60 = vadd.f32 1e-12, %v3406_v59  ;;  %v4323_v59 = vpack.c.bf16 %v3715_v12, %v3714_v57 }
0x1d1d   : > { %4423 = vrsqrt.f32 %v3407_v60  ;;  %v3717_v60 = vld [vmem:[%s4644_s12 + $0x18] sm:$0xff] }
0x1d27   : > { %v4424_v61 = vpop.eup %4423 }
0x1d28   : > { %v3409_v63 = vmul.f32 %v4424_v61, %v3401_v51  ;;  %v4326_v61 = vpack.c.bf16 %v3717_v60, %v3716_v58 }
0x1d2a   : > { %v3416_v1 = vmul.f32 %v3936_v62, %v3409_v63  ;;  %v3639_v62 = vld [vmem:[%s4639_s4] sm:$0x1] }
0x1d2c   : > { %v3423_v2 = vadd.f32 %v3937_v0, %v3416_v1 }
0x1d2e   : > { %4225 = vmatmul.mubr.msk.f32.vlgmr.msra.gmra.mrb[26].mxu0 %vm1002_vm0, %v3423_v2 }
0x1d2f   : > { %4254 = vmatprep.mubr.msk.f32.mxu0 %vm4472_vm1, %v4473_v14  ;;  %4318 = vmatpush3.bf16.msra.mxu0 %v4317_v45 }
0x1d30   : > { %4319 = vmatprep.subr.bf16.mxu0 %v4471_v11 }
0x1d33   : > { %4321 = vmatpush3.bf16.msra.mxu0 %v4320_v48 }
0x1d34   : > { %4322 = vmatprep.subr.bf16.mxu0 %v4471_v11 }
0x1e01   : > { %v3504_v19 = vpop.f32.mrb[26].mxu0 }
0x1e02   : > { %v3505_v20 = vadd.f32 %v3938_v18, %v3504_v19  ;;  %v4226_v21 = vpop.f32.mrb[27].mxu0 }
0x1e04   : > { %v3508_v22 = vmul.f32 %v3505_v20, %v3505_v20 }
0x1e06   : > { %v3509_v23 = vmul.f32 %v3508_v22, %v3505_v20 }
0x1e08   : > { %v3510_v25 = vmul.f32 0.044715, %v3509_v23 }
0x1e0a   : > { %v3511_v26 = vadd.f32 %v3510_v25, %v3505_v20 }
0x1e0c   : > { %v3512_v28 = vmul.f32 0.7978846, %v3511_v26 }
0x1e0e   : > { %4425 = vtanh.f32 %v3512_v28 }
0x1e18   : > { %v4426_v29 = vpop.eup %4425 }
0x1e19   : > { %v3514_v30 = vadd.f32 1.0, %v4426_v29 }
0x1e1b   : > { %v3515_v31 = vmul.f32 0.5, %v3514_v30 }
0x1e1d   : > { %v3516_v32 = vmul.f32 %v3515_v31, %v3505_v20 }
0x1e1f   : > { %4244 = vmatmul.mubr.msk.f32.vlgmr.msra.gmra.mrb[30].mxu1 %vm2233_vm4, %v3516_v32 }
0x1ef2   : > { %v3601_v34 = vpop.f32.mrb[30].mxu1 }
0x1ef3   : > { %v3602_v37 = vadd.f32 %v3940_v33, %v3601_v34  ;;  %v4245_v35 = vpop.f32.mrb[31].mxu1 }
0x1ef5   : > { %v3605_v36 = vadd.f32 %v3602_v37, %v3423_v2 }
0x1ef7   : > { %v3608_v38 = vsel %vm1002_vm0, %v3605_v36, 0.0 }
0x1ef8   : > { %3609 = vadd.xlane.f32.xlu1 %v3608_v38 }
0x1f85   : > { %v3610_v39 = vpop.xlane.xlu1 %3609 }
0x1f86   : > { %v3611_v40 = vmul.f32 0.03125, %v3610_v39 }
0x1f88   : > { %v3612_v15 = vsub.f32 %v3605_v36, %v3611_v40 }
0x1f8a   : > { %v3613_v41 = vmul.f32 %v3612_v15, %v3612_v15 }
0x1f8c   : > { %v3614_v42 = vsel %vm1002_vm0, %v3613_v41, 0.0 }
0x1f8d   : > { %3615 = vadd.xlane.f32.xlu1 %v3614_v42 }
0x201a   : > { %v3616_v49 = vpop.xlane.xlu1 %3615 }
0x201b   : > { %v3617_v50 = vmul.f32 0.03125, %v3616_v49 }
0x201d   : > { %v3618_v51 = vadd.f32 1e-12, %v3617_v50 }
0x201f   : > { %4427 = vrsqrt.f32 %v3618_v51 }
0x2029   : > { %v4428_v52 = vpop.eup %4427 }
0x202a   : > { %v3620_v27 = vmul.f32 %v4428_v52, %v3612_v15 }
0x202c   : > { %v3627_v55 = vmul.f32 %v3942_v53, %v3620_v27 }
0x202e   : > { %v3634_v56 = vadd.f32 %v3943_v54, %v3627_v55 }
0x2030   : > { %4255 = vmatmul.mubr.msk.f32.vlgmr.msra.gmra.mrb[28].mxu0 %vm1002_vm0, %v3634_v56 }
0x2031   : > { %4265 = vmatprep.mubr.msk.f32.mxu0 %vm4472_vm1, %v4473_v14  ;;  %4324 = vmatpush3.bf16.msra.mxu0 %v4323_v59  ;;  %v3718_v14 = vld [vmem:[#allocation2] sm:$0x1] }
0x2032   : > { %4325 = vmatprep.subr.bf16.mxu0 %v4471_v11 }
0x2035   : > { %4327 = vmatpush3.bf16.msra.mxu0 %v4326_v61 }
0x2103   : > { %v3709_v63 = vpop.f32.mrb[28].mxu0 }
0x2104   : > { %v3710_v0 = vadd.f32 %v3709_v63, %v3639_v62  ;;  %v4256_v1 = vpop.f32.mrb[29].mxu0 }
0x2106   : > { %4429 = vtanh.f32 %v3710_v0 }
0x2110   : > { %v4430_v2 = vpop.eup %4429 }
0x2111   : > { %4266 = vmatmul.mubr.msk.f32.vlgmr.msra.gmra.mrb[30].mxu0 %vm1002_vm0, %v4430_v2 }
0x21e4   : > { %v3788_v3 = vpop.f32.mrb[30].mxu0 }
0x21e5   : > { %v3789_v4 = vadd.f32 %v3788_v3, %v3718_v14  ;;  %v4267_v5 = vpop.f32.mrb[31].mxu0 }
0x21e7   : > { %3793 = vst.msk [vmem:[%s995_s16] sm:$0x1] %vm3792_vm5, %v3789_v4 }
0x21e8 PF: > { %s77_s28 = sadd.s32 1, %s4437_s28  }
0x21e9   : > { %p74_p4 = scmp.ge.s32.totalorder %s77_s28, 4  }
0x21eb   :  { %76 = sbr.rel (!%p74_p4) target bundleno = 63 (0x3f), region = 213 }

</bundles_post_ra>
